<compile_context>
chip_gen: v7x
topology: tpu7x:2x2x1
jax: 0.10.0
libtpu: 0.0.40
codegen_flags: <defaults>
</compile_context>

<pallas_src>
import jax
import jax.numpy as jnp
from jax.experimental import pallas as pl
from jax.experimental.pallas import tpu as pltpu

INPUT_SIZE = 19            # len(feature_columns)
LATENT_SIZE = 16
HIDDEN = 64
STACKED = LATENT_SIZE + HIDDEN   # 80

MAX_BATCH_TILE = 8192      # keeps per-step VMEM ~<= 42 MiB -> fits v7x's 64 MiB


def _autoencoder_kernel(x_ref, w1_ref, b1_ref, ws_ref, bs_ref, w4_ref, b4_ref,
                        enc_ref, dec_ref):
    # x tile: (batch_tile, 19) f32, batch on sublanes. Cast to bf16 for the MXU.
    x = x_ref[...].astype(jnp.bfloat16)

    # h1 = relu(x @ W1^T + b1)                              (bt, 64), f32 acc
    h1 = jnp.dot(x, w1_ref[...], preferred_element_type=jnp.float32) + b1_ref[...]
    h1 = jnp.maximum(h1, 0.0)

    # One stacked dot produces enc AND the decoder hidden pre-activation:
    #   st[:, :16] = h1 @ W2^T + b2                          (= enc)
    #   st[:, 16:] = h1 @ (W3 @ W2)^T + (W3 @ b2 + b3)       (= pre-ReLU h2)
    st = jnp.dot(h1.astype(jnp.bfloat16), ws_ref[...],
                 preferred_element_type=jnp.float32) + bs_ref[...]
    enc_ref[...] = st[:, :LATENT_SIZE].astype(enc_ref.dtype)

    h2 = jnp.maximum(st[:, LATENT_SIZE:], 0.0)               # (bt, 64)

    # dec = h2 @ W4^T + b4                                    (bt, 19)
    dec = jnp.dot(h2.astype(jnp.bfloat16), w4_ref[...],
                  preferred_element_type=jnp.float32) + b4_ref[...]
    dec_ref[...] = dec.astype(dec_ref.dtype)


def _prepare_weights(params):
    """PyTorch (out,in) params -> transposed, fused, stacked, bf16 MXU weights."""
    w1, b1, w2, b2, w3, b3, w4, b4 = params
    # Fuse decoder.0 with encoder.2 (f32 math, quantized once to bf16).
    w23 = w3 @ w2                               # (64, 64)
    b23 = w3 @ b2 + b3                          # (64,)
    ws = jnp.concatenate([w2, w23], axis=0)     # (80, 64): rows [enc | dec-hidden]
    bs = jnp.concatenate([b2, b23], axis=0)     # (80,)
    return (
        w1.T.astype(jnp.bfloat16),              # (19, 64)
        b1.reshape(1, -1).astype(jnp.float32),  # (1, 64)
        ws.T.astype(jnp.bfloat16),              # (64, 80)
        bs.reshape(1, -1).astype(jnp.float32),  # (1, 80)
        w4.T.astype(jnp.bfloat16),              # (64, 19)
        b4.reshape(1, -1).astype(jnp.float32),  # (1, 19)
    )


def autoencoder_forward(x, params, *, batch_tile=None):
    """Fused autoencoder forward. x: [B, INPUT_SIZE] float32, any B >= 1."""
    B, F = x.shape
    assert F == INPUT_SIZE

    if batch_tile is None:
        # Big enough to amortize the ~0.35us/step + stationary-weight reload
        # overhead, small enough for VMEM, and >= 2 tiles when B allows so the
        # "parallel" grid axis feeds both v7x TensorCores.
        half = -(-B // 2)                 # ceil(B / 2)
        half = -(-half // 256) * 256      # round up to a multiple of 256
        batch_tile = int(min(MAX_BATCH_TILE, max(256, half)))
    assert batch_tile % 8 == 0, "batch_tile must be a multiple of 8 (256+ recommended)"

    n_tiles = pl.cdiv(B, batch_tile)
    w1t, b1r, wst, bsr, w4t, b4r = _prepare_weights(params)

    def const_spec(a):
        # Whole parameter resident in VMEM; same block every grid step.
        return pl.BlockSpec(a.shape, lambda i: (0, 0))

    # Scoped-VMEM budget: 3 double-buffered I/O streams + a few f32 temporaries,
    # each lane-padded to 128; capped below v7x's 64 MiB physical VMEM.
    per_step_bytes = 10 * batch_tile * 128 * 4
    vmem_limit = int(min(56 * 2**20, max(16 * 2**20, per_step_bytes * 1.25)))

    flops = 2 * B * (INPUT_SIZE * HIDDEN + HIDDEN * STACKED + HIDDEN * INPUT_SIZE)
    bytes_accessed = 4 * B * (INPUT_SIZE + LATENT_SIZE + INPUT_SIZE)

    enc, dec = pl.pallas_call(
        _autoencoder_kernel,
        out_shape=(jax.ShapeDtypeStruct((B, LATENT_SIZE), x.dtype),
                   jax.ShapeDtypeStruct((B, INPUT_SIZE), x.dtype)),
        grid_spec=pltpu.PrefetchScalarGridSpec(
            num_scalar_prefetch=0,
            grid=(n_tiles,),
            in_specs=[
                pl.BlockSpec((batch_tile, INPUT_SIZE), lambda i: (i, 0)),   # x tile
                const_spec(w1t), const_spec(b1r),
                const_spec(wst), const_spec(bsr),
                const_spec(w4t), const_spec(b4r),
            ],
            out_specs=[
                pl.BlockSpec((batch_tile, LATENT_SIZE), lambda i: (i, 0)),  # enc
                pl.BlockSpec((batch_tile, INPUT_SIZE), lambda i: (i, 0)),   # dec
            ],
        ),
        compiler_params=pltpu.CompilerParams(
            dimension_semantics=("parallel",),
            vmem_limit_bytes=vmem_limit),
        cost_estimate=pl.CostEstimate(
            flops=flops, transcendentals=0, bytes_accessed=bytes_accessed),
    )(x, w1t, b1r, wst, bsr, w4t, b4r)

    return enc, dec


def init_params(key):
    """PyTorch-style uniform(-1/sqrt(fan_in), 1/sqrt(fan_in)) init, (out,in) weights."""
    def linear(key, fan_in, fan_out):
        kw, kb = jax.random.split(key)
        bound = 1.0 / jnp.sqrt(float(fan_in))
        w = jax.random.uniform(kw, (fan_out, fan_in), jnp.float32, -bound, bound)
        b = jax.random.uniform(kb, (fan_out,), jnp.float32, -bound, bound)
        return w, b

    k1, k2, k3, k4 = jax.random.split(key, 4)
    w1, b1 = linear(k1, INPUT_SIZE, HIDDEN)     # encoder.0
    w2, b2 = linear(k2, HIDDEN, LATENT_SIZE)    # encoder.2
    w3, b3 = linear(k3, LATENT_SIZE, HIDDEN)    # decoder.0
    w4, b4 = linear(k4, HIDDEN, INPUT_SIZE)     # decoder.2
    return (w1, b1, w2, b2, w3, b3, w4, b4)


def reference_forward(x, params):
    """Pure-f32 reference matching the PyTorch module."""
    w1, b1, w2, b2, w3, b3, w4, b4 = params
    h1 = jnp.maximum(x @ w1.T + b1, 0.0)
    enc = h1 @ w2.T + b2
    h2 = jnp.maximum(enc @ w3.T + b3, 0.0)
    dec = h2 @ w4.T + b4
    return enc, dec


def reference_forward_matched(x, params):
    """JAX reference with the kernel's exact bf16-mul/f32-acc, fused/stacked weights."""
    w1t, b1r, wst, bsr, w4t, b4r = _prepare_weights(params)
    h1 = jnp.maximum(
        jnp.dot(x.astype(jnp.bfloat16), w1t,
                preferred_element_type=jnp.float32) + b1r, 0.0)
    st = jnp.dot(h1.astype(jnp.bfloat16), wst,
                 preferred_element_type=jnp.float32) + bsr
    enc = st[:, :LATENT_SIZE]
    h2 = jnp.maximum(st[:, LATENT_SIZE:], 0.0)
    dec = jnp.dot(h2.astype(jnp.bfloat16), w4t,
                  preferred_element_type=jnp.float32) + b4r
    return enc, dec


if __name__ == "__main__":
    key = jax.random.PRNGKey(0)
    kx, kp = jax.random.split(key)

    # Small demo batch, deliberately NOT a multiple of the auto-chosen tile
    # (512 here) so the partial-last-block path is exercised.
    B = 1000
    x = jax.random.normal(kx, (B, INPUT_SIZE), jnp.float32)
    params = init_params(kp)

    enc, dec = autoencoder_forward(x, params)
    enc, dec = jax.block_until_ready((enc, dec))

    assert enc.shape == (B, LATENT_SIZE) and dec.shape == (B, INPUT_SIZE)

    # Tight check vs. a JAX reference using identical bf16/f32-acc math.
    enc_m, dec_m = reference_forward_matched(x, params)
    assert jnp.allclose(enc, enc_m, atol=1e-3, rtol=1e-3)
    assert jnp.allclose(dec, dec_m, atol=1e-3, rtol=1e-3)

    # Loose check vs. the pure-f32 PyTorch-equivalent forward (bf16 MXU path).
    enc_f, dec_f = reference_forward(x, params)
    assert jnp.allclose(enc, enc_f, atol=5e-2, rtol=5e-2)
    assert jnp.allclose(dec, dec_f, atol=5e-2, rtol=5e-2)

    print("KERNEL_OK")
</pallas_src>

<mosaic_0001>
module attributes {stable_mosaic.version = 11 : i64} {
  func.func @_autoencoder_kernel(%arg0: i32, %arg1: memref<512x19xf32, #tpu.memory_space<vmem>>, %arg2: memref<19x64xbf16, #tpu.memory_space<vmem>>, %arg3: memref<1x64xf32, #tpu.memory_space<vmem>>, %arg4: memref<64x80xbf16, #tpu.memory_space<vmem>>, %arg5: memref<1x80xf32, #tpu.memory_space<vmem>>, %arg6: memref<64x19xbf16, #tpu.memory_space<vmem>>, %arg7: memref<1x19xf32, #tpu.memory_space<vmem>>, %arg8: memref<512x16xf32, #tpu.memory_space<vmem>>, %arg9: memref<512x19xf32, #tpu.memory_space<vmem>>) attributes {dimension_semantics = [#tpu.dimension_semantics<parallel>], iteration_bounds = array<i64: 2>, scalar_prefetch = 0 : i64, scratch_operands = 0 : i64, tpu.core_type = #tpu.core_type<tc>, window_params = [{transform_indices = @transform_0, window_bounds = array<i64: 512, 19>}, {pipeline_mode = #tpu.pipeline_mode<synchronous>, transform_indices = @transform_1, window_bounds = array<i64: 19, 64>}, {pipeline_mode = #tpu.pipeline_mode<synchronous>, transform_indices = @transform_2, window_bounds = array<i64: 1, 64>}, {pipeline_mode = #tpu.pipeline_mode<synchronous>, transform_indices = @transform_3, window_bounds = array<i64: 64, 80>}, {pipeline_mode = #tpu.pipeline_mode<synchronous>, transform_indices = @transform_4, window_bounds = array<i64: 1, 80>}, {pipeline_mode = #tpu.pipeline_mode<synchronous>, transform_indices = @transform_5, window_bounds = array<i64: 64, 19>}, {pipeline_mode = #tpu.pipeline_mode<synchronous>, transform_indices = @transform_6, window_bounds = array<i64: 1, 19>}, {transform_indices = @transform_7, window_bounds = array<i64: 512, 16>}, {transform_indices = @transform_8, window_bounds = array<i64: 512, 19>}]} {
    %c0 = arith.constant 0 : index
    %c0_0 = arith.constant 0 : index
    %0 = vector.load %arg1[%c0, %c0_0] : memref<512x19xf32, #tpu.memory_space<vmem>>, vector<512x19xf32>
    %1 = arith.truncf %0 : vector<512x19xf32> to vector<512x19xbf16>
    %c0_1 = arith.constant 0 : index
    %c0_2 = arith.constant 0 : index
    %2 = vector.load %arg2[%c0_1, %c0_2] : memref<19x64xbf16, #tpu.memory_space<vmem>>, vector<19x64xbf16>
    %cst = arith.constant dense<0.000000e+00> : vector<512x64xf32>
    %3 = tpu.matmul %1, %2, %cst {dimension_numbers = #tpu.dot_dimension_numbers<[1], [0], [0], [1], [0, 0, 1, 1], [], []>} : vector<512x19xbf16>, vector<19x64xbf16>, vector<512x64xf32> -> vector<512x64xf32>
    %c0_3 = arith.constant 0 : index
    %c0_4 = arith.constant 0 : index
    %4 = vector.load %arg3[%c0_3, %c0_4] : memref<1x64xf32, #tpu.memory_space<vmem>>, vector<1x64xf32>
    %5 = vector.broadcast %4 : vector<1x64xf32> to vector<512x64xf32>
    %6 = arith.addf %3, %5 : vector<512x64xf32>
    %cst_5 = arith.constant 0.000000e+00 : f32
    %7 = vector.broadcast %cst_5 : f32 to vector<512x64xf32>
    %8 = arith.maximumf %6, %7 : vector<512x64xf32>
    %9 = arith.truncf %8 : vector<512x64xf32> to vector<512x64xbf16>
    %c0_6 = arith.constant 0 : index
    %c0_7 = arith.constant 0 : index
    %10 = vector.load %arg4[%c0_6, %c0_7] : memref<64x80xbf16, #tpu.memory_space<vmem>>, vector<64x80xbf16>
    %cst_8 = arith.constant dense<0.000000e+00> : vector<512x80xf32>
    %11 = tpu.matmul %9, %10, %cst_8 {dimension_numbers = #tpu.dot_dimension_numbers<[1], [0], [0], [1], [0, 0, 1, 1], [], []>} : vector<512x64xbf16>, vector<64x80xbf16>, vector<512x80xf32> -> vector<512x80xf32>
    %c0_9 = arith.constant 0 : index
    %c0_10 = arith.constant 0 : index
    %12 = vector.load %arg5[%c0_9, %c0_10] : memref<1x80xf32, #tpu.memory_space<vmem>>, vector<1x80xf32>
    %13 = vector.broadcast %12 : vector<1x80xf32> to vector<512x80xf32>
    %14 = arith.addf %11, %13 : vector<512x80xf32>
    %15 = vector.extract_strided_slice %14 {offsets = [0, 0], sizes = [512, 16], strides = [1, 1]} : vector<512x80xf32> to vector<512x16xf32>
    %c0_11 = arith.constant 0 : index
    %c0_12 = arith.constant 0 : index
    %16 = vector.load %arg8[%c0_11, %c0_12] : memref<512x16xf32, #tpu.memory_space<vmem>>, vector<512x16xf32>
    tpu.vector_store %arg8[%c0_11, %c0_12], %15 {strides = array<i32>} : memref<512x16xf32, #tpu.memory_space<vmem>>, vector<512x16xf32>,
    %17 = vector.extract_strided_slice %14 {offsets = [0, 16], sizes = [512, 64], strides = [1, 1]} : vector<512x80xf32> to vector<512x64xf32>
    %cst_13 = arith.constant 0.000000e+00 : f32
    %18 = vector.broadcast %cst_13 : f32 to vector<512x64xf32>
    %19 = arith.maximumf %17, %18 : vector<512x64xf32>
    %20 = arith.truncf %19 : vector<512x64xf32> to vector<512x64xbf16>
    %c0_14 = arith.constant 0 : index
    %c0_15 = arith.constant 0 : index
    %21 = vector.load %arg6[%c0_14, %c0_15] : memref<64x19xbf16, #tpu.memory_space<vmem>>, vector<64x19xbf16>
    %cst_16 = arith.constant dense<0.000000e+00> : vector<512x19xf32>
    %22 = tpu.matmul %20, %21, %cst_16 {dimension_numbers = #tpu.dot_dimension_numbers<[1], [0], [0], [1], [0, 0, 1, 1], [], []>} : vector<512x64xbf16>, vector<64x19xbf16>, vector<512x19xf32> -> vector<512x19xf32>
    %c0_17 = arith.constant 0 : index
    %c0_18 = arith.constant 0 : index
    %23 = vector.load %arg7[%c0_17, %c0_18] : memref<1x19xf32, #tpu.memory_space<vmem>>, vector<1x19xf32>
    %24 = vector.broadcast %23 : vector<1x19xf32> to vector<512x19xf32>
    %25 = arith.addf %22, %24 : vector<512x19xf32>
    %c0_19 = arith.constant 0 : index
    %c0_20 = arith.constant 0 : index
    %26 = vector.load %arg9[%c0_19, %c0_20] : memref<512x19xf32, #tpu.memory_space<vmem>>, vector<512x19xf32>
    tpu.vector_store %arg9[%c0_19, %c0_20], %25 {strides = array<i32>} : memref<512x19xf32, #tpu.memory_space<vmem>>, vector<512x19xf32>,
    return
  }
  func.func @transform_0(%arg0: i32) -> (i32, i32) {
    %c0_i32 = arith.constant 0 : i32
    %c0_i32_0 = arith.constant 0 : i32
    return %arg0, %c0_i32 : i32, i32
  }
  func.func @transform_1(%arg0: i32) -> (i32, i32) {
    %c0_i32 = arith.constant 0 : i32
    %c0_i32_0 = arith.constant 0 : i32
    %c0_i32_1 = arith.constant 0 : i32
    return %c0_i32, %c0_i32_0 : i32, i32
  }
  func.func @transform_2(%arg0: i32) -> (i32, i32) {
    %c0_i32 = arith.constant 0 : i32
    %c0_i32_0 = arith.constant 0 : i32
    %c0_i32_1 = arith.constant 0 : i32
    return %c0_i32, %c0_i32_0 : i32, i32
  }
  func.func @transform_3(%arg0: i32) -> (i32, i32) {
    %c0_i32 = arith.constant 0 : i32
    %c0_i32_0 = arith.constant 0 : i32
    %c0_i32_1 = arith.constant 0 : i32
    return %c0_i32, %c0_i32_0 : i32, i32
  }
  func.func @transform_4(%arg0: i32) -> (i32, i32) {
    %c0_i32 = arith.constant 0 : i32
    %c0_i32_0 = arith.constant 0 : i32
    %c0_i32_1 = arith.constant 0 : i32
    return %c0_i32, %c0_i32_0 : i32, i32
  }
  func.func @transform_5(%arg0: i32) -> (i32, i32) {
    %c0_i32 = arith.constant 0 : i32
    %c0_i32_0 = arith.constant 0 : i32
    %c0_i32_1 = arith.constant 0 : i32
    return %c0_i32, %c0_i32_0 : i32, i32
  }
  func.func @transform_6(%arg0: i32) -> (i32, i32) {
    %c0_i32 = arith.constant 0 : i32
    %c0_i32_0 = arith.constant 0 : i32
    %c0_i32_1 = arith.constant 0 : i32
    return %c0_i32, %c0_i32_0 : i32, i32
  }
  func.func @transform_7(%arg0: i32) -> (i32, i32) {
    %c0_i32 = arith.constant 0 : i32
    %c0_i32_0 = arith.constant 0 : i32
    return %arg0, %c0_i32 : i32, i32
  }
  func.func @transform_8(%arg0: i32) -> (i32, i32) {
    %c0_i32 = arith.constant 0 : i32
    %c0_i32_0 = arith.constant 0 : i32
    return %arg0, %c0_i32 : i32, i32
  }
}

</mosaic_0001>

<bundles_post_ra>
// kernel: tpu_custom_call.1
= control target key start
LH: loop header
LB: loop body
LE: loop exit
PB: predicated region body
PF: predicated region fallthrough
CT: control target
= control target key end

     0   :  { %s5030_s0 = inlined_call_operand.vmem [shape: f32[1000,19], index: 0, kind: input, shape index: {}]   ;;  %s5031_s1 = inlined_call_operand.vmem [shape: bf16[19,64], index: 1, kind: input, shape index: {}]   ;;  %s5032_s2 = inlined_call_operand.vmem [shape: f32[1,64], index: 2, kind: input, shape index: {}]   ;;  %s5033_s3 = inlined_call_operand.vmem [shape: bf16[64,80], index: 3, kind: input, shape index: {}]   ;;  %s5034_s4 = inlined_call_operand.vmem [shape: f32[1,80], index: 4, kind: input, shape index: {}]   ;;  %s5035_s5 = inlined_call_operand.vmem [shape: bf16[64,19], index: 5, kind: input, shape index: {}]   ;;  %s5036_s6 = inlined_call_operand.vmem [shape: f32[1,19], index: 6, kind: input, shape index: {}]   ;;  %s5037_s7 = inlined_call_operand.vmem [shape: f32[1000,16], index: 7, kind: output, shape index: {0}]   ;;  %s5038_s8 = inlined_call_operand.vmem [shape: f32[1000,19], index: 8, kind: output, shape index: {1}]  }
   0x1   :  { %5039 = sst [smem:[#allocation4_spill]] %s5030_s0 }
   0x2   :  { %s3865_s27 = smov 0   ;;  %s3867_s28 = smov 0  }
   0x3   :  { %s3869_s29 = smov 0  }
   0x4 LB: > { %s3878_s30 = sadd.s32 4294967295, %s3752_s29   ;;  %s3880_s9 = sadd.s32 1, %s3752_s29   ;;  %s3752_s29 = sphi %s3869_s29, %s5054_s29   ;;  %s3748_s28 = sphi %s3867_s28, %s5053_s28   ;;  %s3744_s27 = sphi %s3865_s27, %s5052_s27  }
   0x5   : > { %s175_s10 = ssub.s32 %s3752_s29, %s3880_s9  ;;  %s178_s11 = sadd.s32 1, %s3748_s28 }
   0x6   : > { %p176_p0 = scmp.eq.s32.totalorder %s175_s10, 0  ;;  %p188_p1 = scmp.ne.s32.totalorder %s3748_s28, %s3744_s27 }
   0x7   : > { %p189_p2 = scmp.eq.s32.totalorder %s3878_s30, 1  ;;  %p3028_p3 = scmp.ge.s32.totalorder %s3752_s29, 1 }
   0x8   : > { %s3888_s12 = scalar_select %p176_p0, %s3748_s28, %s178_s11  }
   0x9   : > { %p3890_p4 = por %p189_p2, %p188_p1  ;;  %p274_p5 = scmp.lt.s32.totalorder %s3752_s29, 3 }
   0xb   : > { %p275_p6 = pnand %p3028_p3, %p274_p5 }
   0xc   : > { %v3656_v0 = vld [vmem:[%s5031_s1] sm:$0xff] (!%p275_p6)   ;;  %vm552_vm0 = vcmask (!%p275_p6), 1040384   ;;  %v3657_v1 = vld [vmem:[%s5031_s1 + $0x8] ss:$0 sps:$4 sm:$0x33] (!%p275_p6)   ;;  %vm553_vm1 = vcmask (!%p275_p6), 1041408  }
   0xd   : > { %278 = sbr.rel (%p275_p6) target bundleno = 1079 (0x437), region = 48  ;;  %3286 = vmatprep.subr.bf16.mxu0 (!%p275_p6), %v3656_v0  ;;  %s3901_s18 = sshll.u32 (!%p275_p6), %s3878_s30, 6  ;;  %3498 = vmatprep.subr.bf16.mxu1 (!%p275_p6), %v3656_v0  ;;  %v3818_v2 = vmov (!%p275_p6), 65535   ;;  %v3658_v6 = vld [vmem:[%s5033_s3] sm:$0xff] (!%p275_p6)   ;;  %vm455_vm2 = vcmask (!%p275_p6), 154624   ;;  %v3659_v33 = vld [vmem:[%s5033_s3 + $0x8] sm:$0xff] (!%p275_p6)  }
   0xe   : > { %3287 = vmatpush3.bf16.msra.mxu0 (!%p275_p6), %v3656_v0  ;;  %v554_v3 = vsel (!%p275_p6), %vm552_vm0, 4294967295, %v3818_v2  ;;  %p320_p7 = scmp.lt.s32.totalorder (!%p275_p6), %s3901_s18, 124  ;;  %3500 = vmatpush3.bf16.msra.mxu1 (!%p275_p6), %v3656_v0  ;;  %s5041_s0 = sld [smem:[#allocation4_spill]] (!%p275_p6)  ;;  %v3660_v42 = vld [vmem:[%s5033_s3 + $0x10] sm:$0xff] (!%p275_p6)   ;;  %v3661_v46 = vld [vmem:[%s5033_s3 + $0x18] sm:$0xff] (!%p275_p6)   ;;  %vm983_vm3 = vcmask (!%p275_p6), 523264  }
   0xf   : > { %v555_v4 = vsel (!%p275_p6), %vm553_vm1, %v554_v3, 0  ;;  %s306_s29 = sand.u32 (!%p275_p6), 1, %s3744_s27   ;;  %vm1369_vm4 = vcmask (!%p275_p6), 130048   ;;  %s3819_s27 = smov (!%p275_p6), 112  }
  0x10   : > { %v557_v5 = vand.u32 (!%p275_p6), %v3657_v1, %v555_v4  ;;  %s4162_s10 = sshll.u32 (!%p275_p6), %s306_s29, 9 }
  0x11   : > { %s4172_s15 = scalar_lea.vmem (!%p275_p6), [#allocation2], %s4162_s10  }
  0x12   : > { %3288 = vmatprep.subr.bf16.mxu0 (!%p275_p6), %v557_v5  ;;  %3499 = vmatprep.subr.bf16.mxu1 (!%p275_p6), %v557_v5 }
  0x13   : > { %3289 = vmatpush3.bf16.msra.mxu0 (!%p275_p6), %v557_v5  ;;  %3501 = vmatpush3.bf16.msra.mxu1 (!%p275_p6), %v557_v5 }
  0x14   : > { %s321_s19 = scalar_select %p320_p7, %s3901_s18, 124  ;;  %3354 = vmatprep.subr.bf16.mxu1 %v3658_v6 }
  0x15   : > { %s2126_s20 = ssub.s32 (%p3890_p4), 125, %s3901_s18  ;;  %s3174_s21 = sshll.u32 (%p3890_p4), %s3878_s30, 9 }
  0x16   : > { %s3032_s22 = sshll.u32 %s321_s19, 3  ;;  %s4436_s19 = scalar_lea.vmem [#allocation3], %s4162_s10  }
  0x17   : > { %s3911_s25 = scalar_lea.vmem %s5041_s0, %s3032_s22  ;;  %p2127_p8 = scmp.lt.s32.totalorder (%p3890_p4), %s2126_s20, 64 }
  0x18   : > { %v340_v7 = vld [vmem:[%s3911_s25] sm:$0xff]  ;;  %v341_v8 = vld [vmem:[%s3911_s25 + $0x8] sm:$0xff]  ;;  %v342_v9 = vld [vmem:[%s3911_s25 + $0x10] sm:$0xff]  ;;  %s4635_s24 = scalar_lea.vmem (%p3890_p4), %s5037_s7, %s3174_s21  }
  0x19   : > { %v404_v10 = vpack.c.bf16 %v341_v8, %v340_v7  ;;  %v343_v11 = vld [vmem:[%s3911_s25 + $0x18] sm:$0xff]  ;;  %v344_v12 = vld [vmem:[%s3911_s25 + $0x20] sm:$0xff]  ;;  %v345_v13 = vld [vmem:[%s3911_s25 + $0x28] sm:$0xff] }
  0x1a   : > { %v405_v14 = vpack.c.bf16 %v343_v11, %v342_v9  ;;  %v406_v15 = vpack.c.bf16 %v345_v13, %v344_v12  ;;  %v346_v16 = vld [vmem:[%s3911_s25 + $0x30] sm:$0xff]  ;;  %v347_v17 = vld [vmem:[%s3911_s25 + $0x38] sm:$0xff]  ;;  %v348_v18 = vld [vmem:[%s3911_s25 + $0x40] sm:$0xff] }
  0x1b   : > { %3290 = vmatprep.mubr.msk.bf16.mxu0 %vm455_vm2, %v404_v10  ;;  %v349_v19 = vld [vmem:[%s3911_s25 + $0x48] sm:$0xff]  ;;  %v407_v20 = vpack.c.bf16 %v347_v17, %v346_v16  ;;  %v372_v22 = vld [vmem:[%s3911_s25 + $0x100] sm:$0xff]  ;;  %v374_v24 = vld [vmem:[%s3911_s25 + $0x110] sm:$0xff] }
  0x1c   : > { %3291 = vmatmul.mubr.msk.bf16.vlgmr.msra.gmra.mrb[0].mxu0 %vm455_vm2, %v405_v14  ;;  %v408_v21 = vpack.c.bf16 %v349_v19, %v348_v18  ;;  %v373_v23 = vld [vmem:[%s3911_s25 + $0x108] sm:$0xff]  ;;  %v375_v25 = vld [vmem:[%s3911_s25 + $0x118] sm:$0xff]  ;;  %v376_v28 = vld [vmem:[%s3911_s25 + $0x120] sm:$0xff] }
  0x1d   : > { %3294 = vmatprep.mubr.msk.bf16.mxu0 %vm455_vm2, %v406_v15  ;;  %v420_v26 = vpack.c.bf16 %v373_v23, %v372_v22  ;;  %v421_v27 = vpack.c.bf16 %v375_v25, %v374_v24  ;;  %v377_v29 = vld [vmem:[%s3911_s25 + $0x128] sm:$0xff]  ;;  %v350_v30 = vld [vmem:[%s3911_s25 + $0x50] sm:$0xff]  ;;  %v351_v31 = vld [vmem:[%s3911_s25 + $0x58] sm:$0xff] }
  0x1e   : > { %v422_v32 = vpack.c.bf16 %v377_v29, %v376_v28  ;;  %v352_v34 = vld [vmem:[%s3911_s25 + $0x60] sm:$0xff]  ;;  %v353_v35 = vld [vmem:[%s3911_s25 + $0x68] sm:$0xff]  ;;  %v409_v36 = vpack.c.bf16 %v351_v31, %v350_v30  ;;  %v378_v37 = vld [vmem:[%s3911_s25 + $0x130] sm:$0xff] }
  0x1f   : > { %3322 = vmatprep.mubr.msk.bf16.mxu1 %vm455_vm2, %v420_v26  ;;  %v379_v38 = vld [vmem:[%s3911_s25 + $0x138] sm:$0xff]  ;;  %v410_v39 = vpack.c.bf16 %v353_v35, %v352_v34  ;;  %v380_v40 = vld [vmem:[%s3911_s25 + $0x140] sm:$0xff]  ;;  %v381_v41 = vld [vmem:[%s3911_s25 + $0x148] sm:$0xff] }
  0x20   : > { %3323 = vmatmul.mubr.msk.bf16.vlgmr.msra.gmra.mrb[0].mxu1 %vm455_vm2, %v421_v27  ;;  %v423_v43 = vpack.c.bf16 %v379_v38, %v378_v37  ;;  %v354_v44 = vld [vmem:[%s3911_s25 + $0x70] sm:$0xff]  ;;  %v424_v45 = vpack.c.bf16 %v381_v41, %v380_v40  ;;  %v355_v47 = vld [vmem:[%s3911_s25 + $0x78] sm:$0xff]  ;;  %v356_v48 = vld [vmem:[%s3911_s25 + $0x80] sm:$0xff] }
  0x21   : > { %3326 = vmatprep.mubr.msk.bf16.mxu1 %vm455_vm2, %v422_v32  ;;  %3355 = vmatpush3.bf16.msra.mxu1 %v3658_v6  ;;  %v357_v49 = vld [vmem:[%s3911_s25 + $0x88] sm:$0xff]  ;;  %v411_v50 = vpack.c.bf16 %v355_v47, %v354_v44  ;;  %v382_v51 = vld [vmem:[%s3911_s25 + $0x150] sm:$0xff]  ;;  %v383_v52 = vld [vmem:[%s3911_s25 + $0x158] sm:$0xff] }
  0x22   : > { %3356 = vmatprep.subr.bf16.mxu1 %v3659_v33  ;;  %v412_v53 = vpack.c.bf16 %v357_v49, %v356_v48  ;;  %v384_v54 = vld [vmem:[%s3911_s25 + $0x160] sm:$0xff]  ;;  %v385_v55 = vld [vmem:[%s3911_s25 + $0x168] sm:$0xff]  ;;  %v425_v56 = vpack.c.bf16 %v383_v52, %v382_v51  ;;  %v358_v58 = vld [vmem:[%s3911_s25 + $0x90] sm:$0xff] }
  0x23   : > { %v426_v57 = vpack.c.bf16 %v385_v55, %v384_v54  ;;  %v359_v59 = vld [vmem:[%s3911_s25 + $0x98] sm:$0xff]  ;;  %v360_v60 = vld [vmem:[%s3911_s25 + $0xa0] sm:$0xff]  ;;  %v361_v61 = vld [vmem:[%s3911_s25 + $0xa8] sm:$0xff] }
  0x24   : > { %3295 = vmatmul.mubr.msk.bf16.gmra.mrb[4].mxu0 %vm455_vm2, %v407_v20  ;;  %v413_v62 = vpack.c.bf16 %v359_v59, %v358_v58  ;;  %v386_v63 = vld [vmem:[%s3911_s25 + $0x170] sm:$0xff]  ;;  %v387_v0 = vld [vmem:[%s3911_s25 + $0x178] sm:$0xff]  ;;  %v414_v1 = vpack.c.bf16 %v361_v61, %v360_v60  ;;  %v388_v2 = vld [vmem:[%s3911_s25 + $0x180] sm:$0xff] }
  0x25   : > { %3298 = vmatprep.mubr.msk.bf16.mxu0 %vm455_vm2, %v408_v21  ;;  %3357 = vmatpush3.bf16.msra.mxu1 %v3659_v33  ;;  %v389_v3 = vld [vmem:[%s3911_s25 + $0x188] sm:$0xff]  ;;  %v427_v4 = vpack.c.bf16 %v387_v0, %v386_v63  ;;  %v362_v6 = vld [vmem:[%s3911_s25 + $0xb0] sm:$0xff]  ;;  %v363_v7 = vld [vmem:[%s3911_s25 + $0xb8] sm:$0xff] }
  0x26   : > { %3358 = vmatprep.subr.bf16.mxu1 %v3660_v42  ;;  %v428_v5 = vpack.c.bf16 %v389_v3, %v388_v2  ;;  %v364_v8 = vld [vmem:[%s3911_s25 + $0xc0] sm:$0xff]  ;;  %v365_v9 = vld [vmem:[%s3911_s25 + $0xc8] sm:$0xff]  ;;  %v415_v10 = vpack.c.bf16 %v363_v7, %v362_v6  ;;  %v390_v11 = vld [vmem:[%s3911_s25 + $0x190] sm:$0xff] }
  0x27   : > { %v391_v12 = vld [vmem:[%s3911_s25 + $0x198] sm:$0xff]  ;;  %v416_v13 = vpack.c.bf16 %v365_v9, %v364_v8  ;;  %v392_v14 = vld [vmem:[%s3911_s25 + $0x1a0] sm:$0xff]  ;;  %v393_v15 = vld [vmem:[%s3911_s25 + $0x1a8] sm:$0xff] }
  0x28   : > { %3327 = vmatmul.mubr.msk.bf16.gmra.mrb[4].mxu1 %vm455_vm2, %v423_v43  ;;  %v429_v16 = vpack.c.bf16 %v391_v12, %v390_v11  ;;  %v430_v17 = vpack.c.bf16 %v393_v15, %v392_v14  ;;  %v366_v18 = vld [vmem:[%s3911_s25 + $0xd0] sm:$0xff]  ;;  %v367_v19 = vld [vmem:[%s3911_s25 + $0xd8] sm:$0xff]  ;;  %v368_v20 = vld [vmem:[%s3911_s25 + $0xe0] sm:$0xff] }
  0x29   : > { %3330 = vmatprep.mubr.msk.bf16.mxu1 %vm455_vm2, %v424_v45  ;;  %3359 = vmatpush3.bf16.msra.mxu1 %v3660_v42  ;;  %v369_v21 = vld [vmem:[%s3911_s25 + $0xe8] sm:$0xff]  ;;  %v417_v22 = vpack.c.bf16 %v367_v19, %v366_v18  ;;  %v394_v23 = vld [vmem:[%s3911_s25 + $0x1b0] sm:$0xff]  ;;  %v395_v24 = vld [vmem:[%s3911_s25 + $0x1b8] sm:$0xff] }
  0x2a   : > { %3360 = vmatprep.subr.bf16.mxu1 %v3661_v46  ;;  %v418_v25 = vpack.c.bf16 %v369_v21, %v368_v20  ;;  %v396_v26 = vld [vmem:[%s3911_s25 + $0x1c0] sm:$0xff]  ;;  %v397_v27 = vld [vmem:[%s3911_s25 + $0x1c8] sm:$0xff]  ;;  %v431_v28 = vpack.c.bf16 %v395_v24, %v394_v23  ;;  %v370_v30 = vld [vmem:[%s3911_s25 + $0xf0] sm:$0xff] }
  0x2b   : > { %v432_v29 = vpack.c.bf16 %v397_v27, %v396_v26  ;;  %v371_v31 = vld [vmem:[%s3911_s25 + $0xf8] sm:$0xff]  ;;  %v398_v33 = vld [vmem:[%s3911_s25 + $0x1d0] sm:$0xff]  ;;  %v400_v35 = vld [vmem:[%s3911_s25 + $0x1e0] sm:$0xff] }
  0x2c   : > { %3299 = vmatmul.mubr.msk.bf16.gmra.mrb[8].mxu0 %vm455_vm2, %v409_v36  ;;  %v419_v32 = vpack.c.bf16 %v371_v31, %v370_v30  ;;  %v399_v34 = vld [vmem:[%s3911_s25 + $0x1d8] sm:$0xff]  ;;  %v401_v36 = vld [vmem:[%s3911_s25 + $0x1e8] sm:$0xff]  ;;  %v4021_v42 = vld [vmem:[%s5032_s2] ss:$0 sm:$0xff] }
  0x2d   : > { %3302 = vmatprep.mubr.msk.bf16.mxu0 %vm455_vm2, %v410_v39  ;;  %3361 = vmatpush3.bf16.msra.mxu1 %v3661_v46  ;;  %v433_v37 = vpack.c.bf16 %v399_v34, %v398_v33  ;;  %v434_v38 = vpack.c.bf16 %v401_v36, %v400_v35  ;;  %v402_v39 = vld [vmem:[%s3911_s25 + $0x1f0] sm:$0xff]  ;;  %v403_v40 = vld [vmem:[%s3911_s25 + $0x1f8] sm:$0xff] }
  0x2e   : > { %v435_v41 = vpack.c.bf16 %v403_v40, %v402_v39 }
  0x30   : > { %3331 = vmatmul.mubr.msk.bf16.gmra.mrb[8].mxu1 %vm455_vm2, %v425_v56 }
  0x31   : > { %3334 = vmatprep.mubr.msk.bf16.mxu1 %vm455_vm2, %v426_v57 }
  0x34   : > { %3303 = vmatmul.mubr.msk.bf16.gmra.mrb[12].mxu0 %vm455_vm2, %v411_v50 }
  0x35   : > { %3306 = vmatprep.mubr.msk.bf16.mxu0 %vm455_vm2, %v412_v53 }
  0x38   : > { %3335 = vmatmul.mubr.msk.bf16.gmra.mrb[12].mxu1 %vm455_vm2, %v427_v4 }
  0x39   : > { %3338 = vmatprep.mubr.msk.bf16.mxu1 %vm455_vm2, %v428_v5 }
  0x3c   : > { %3307 = vmatmul.mubr.msk.bf16.gmra.mrb[16].mxu0 %vm455_vm2, %v413_v62 }
  0x3d   : > { %3310 = vmatprep.mubr.msk.bf16.mxu0 %vm455_vm2, %v414_v1 }
  0x40   : > { %3339 = vmatmul.mubr.msk.bf16.gmra.mrb[16].mxu1 %vm455_vm2, %v429_v16 }
  0x41   : > { %3342 = vmatprep.mubr.msk.bf16.mxu1 %vm455_vm2, %v430_v17 }
  0x44   : > { %3311 = vmatmul.mubr.msk.bf16.gmra.mrb[20].mxu0 %vm455_vm2, %v415_v10 }
  0x45   : > { %3314 = vmatprep.mubr.msk.bf16.mxu0 %vm455_vm2, %v416_v13 }
  0x48   : > { %3343 = vmatmul.mubr.msk.bf16.gmra.mrb[20].mxu1 %vm455_vm2, %v431_v28 }
  0x49   : > { %3346 = vmatprep.mubr.msk.bf16.mxu1 %vm455_vm2, %v432_v29 }
  0x4c   : > { %3315 = vmatmul.mubr.msk.bf16.gmra.mrb[24].mxu0 %vm455_vm2, %v417_v22 }
  0x4d   : > { %3318 = vmatprep.mubr.msk.bf16.mxu0 %vm455_vm2, %v418_v25 }
  0x50   : > { %3347 = vmatmul.mubr.msk.bf16.gmra.mrb[24].mxu1 %vm455_vm2, %v433_v37 }
  0x51   : > { %3350 = vmatprep.mubr.msk.bf16.mxu1 %vm455_vm2, %v434_v38 }
  0x54   : > { %3319 = vmatmul.mubr.msk.bf16.gmra.mrb[28].mxu0 %vm455_vm2, %v419_v32 }
  0x58   : > { %3351 = vmatmul.mubr.msk.bf16.gmra.mrb[28].mxu1 %vm455_vm2, %v435_v41 }
  0xef   : > { %v3292_v43 = vpop.f32.mrb[0].mxu0 }
  0xf0   : > { %v602_v44 = vadd.f32 %v3292_v43, %v4021_v42  ;;  %v593_v45 = vpop.f32.mrb[1].mxu0 }
  0xf1   : > { %v594_v46 = vadd.f32 %v4021_v42, %v593_v45  ;;  %v3293_v47 = vpop.f32.mrb[2].mxu0 }
  0xf2   : > { %v605_v48 = vadd.f32 %v3293_v47, %v4021_v42  ;;  %v596_v49 = vpop.f32.mrb[3].mxu0  ;;  %v850_v51 = vmax.f32 %v602_v44, 0.0 }
  0xf3   : > { %v597_v50 = vadd.f32 %v4021_v42, %v596_v49  ;;  %v848_v53 = vmax.f32 %v594_v46, 0.0  ;;  %v3324_v0 = vpop.f32.mrb[0].mxu1 }
  0xf4   : > { %v851_v52 = vmax.f32 %v605_v48, 0.0  ;;  %v730_v2 = vadd.f32 %v3324_v0, %v4021_v42  ;;  %v721_v3 = vpop.f32.mrb[1].mxu1 }
  0xf5   : > { %v849_v54 = vmax.f32 %v597_v50, 0.0  ;;  %v722_v6 = vadd.f32 %v4021_v42, %v721_v3  ;;  %v3325_v7 = vpop.f32.mrb[2].mxu1 }
  0xf6   : > { %v913_v55 = vpack.c.bf16 %v851_v52, %v850_v51  ;;  %v882_v10 = vmax.f32 %v730_v2, 0.0  ;;  %v733_v11 = vadd.f32 %v3325_v7, %v4021_v42  ;;  %v724_v12 = vpop.f32.mrb[3].mxu1 }
  0xf7   : > { %v912_v56 = vpack.c.bf16 %v849_v54, %v848_v53  ;;  %v3296_v57 = vpop.f32.mrb[4].mxu0  ;;  %v880_v14 = vmax.f32 %v722_v6, 0.0  ;;  %v725_v15 = vadd.f32 %v4021_v42, %v724_v12 }
  0xf8   : > { %v618_v58 = vadd.f32 %v3296_v57, %v4021_v42  ;;  %v609_v59 = vpop.f32.mrb[5].mxu0  ;;  %v883_v18 = vmax.f32 %v733_v11, 0.0 }
  0xf9   : > { %v610_v60 = vadd.f32 %v4021_v42, %v609_v59  ;;  %v3297_v61 = vpop.f32.mrb[6].mxu0  ;;  %3362 = vmatprep.mubr.msk.bf16.mxu1 %vm983_vm3, %v912_v56  ;;  %v881_v21 = vmax.f32 %v725_v15, 0.0 }
  0xfa   : > { %v621_v62 = vadd.f32 %v3297_v61, %v4021_v42  ;;  %v612_v63 = vpop.f32.mrb[7].mxu0  ;;  %3363 = vmatmul.mubr.msk.bf16.vlgmr.msra.gmra.mrb[32].mxu1 %vm983_vm3, %v913_v55  ;;  %v854_v4 = vmax.f32 %v618_v58, 0.0  ;;  %v4040_v24 = vpack.c.bf16 %v883_v18, %v882_v10 }
  0xfb   : > { %v613_v1 = vadd.f32 %v4021_v42, %v612_v63  ;;  %v852_v8 = vmax.f32 %v610_v60, 0.0  ;;  %v4044_v28 = vpack.c.bf16 %v881_v21, %v880_v14  ;;  %v3328_v29 = vpop.f32.mrb[4].mxu1 }
  0xfc   : > { %v855_v5 = vmax.f32 %v621_v62, 0.0  ;;  %v746_v32 = vadd.f32 %v3328_v29, %v4021_v42  ;;  %v737_v33 = vpop.f32.mrb[5].mxu1 }
  0xfd   : > { %v853_v9 = vmax.f32 %v613_v1, 0.0  ;;  %v738_v35 = vadd.f32 %v4021_v42, %v737_v33  ;;  %v3329_v36 = vpop.f32.mrb[6].mxu1 }
  0xfe   : > { %v915_v13 = vpack.c.bf16 %v855_v5, %v854_v4  ;;  %v886_v38 = vmax.f32 %v746_v32, 0.0  ;;  %v749_v39 = vadd.f32 %v3329_v36, %v4021_v42  ;;  %v740_v40 = vpop.f32.mrb[7].mxu1 }
  0xff   : > { %v914_v16 = vpack.c.bf16 %v853_v9, %v852_v8  ;;  %v3300_v17 = vpop.f32.mrb[8].mxu0  ;;  %v884_v43 = vmax.f32 %v738_v35, 0.0  ;;  %v741_v44 = vadd.f32 %v4021_v42, %v740_v40 }
 0x100   : > { %v634_v19 = vadd.f32 %v3300_v17, %v4021_v42  ;;  %v625_v20 = vpop.f32.mrb[9].mxu0  ;;  %v887_v47 = vmax.f32 %v749_v39, 0.0 }
 0x101   : > { %v626_v22 = vadd.f32 %v4021_v42, %v625_v20  ;;  %v3301_v23 = vpop.f32.mrb[10].mxu0  ;;  %3366 = vmatprep.mubr.msk.bf16.mxu1 %vm983_vm3, %v914_v16  ;;  %v885_v50 = vmax.f32 %v741_v44, 0.0 }
 0x102   : > { %v858_v25 = vmax.f32 %v634_v19, 0.0  ;;  %v637_v26 = vadd.f32 %v3301_v23, %v4021_v42  ;;  %v628_v27 = vpop.f32.mrb[11].mxu0  ;;  %3367 = vmatmul.mubr.msk.bf16.gmra.mrb[36].mxu1 %vm983_vm3, %v915_v13  ;;  %v4054_v53 = vpack.c.bf16 %v887_v47, %v886_v38 }
 0x103   : > { %v856_v30 = vmax.f32 %v626_v22, 0.0  ;;  %v629_v31 = vadd.f32 %v4021_v42, %v628_v27  ;;  %v4058_v57 = vpack.c.bf16 %v885_v50, %v884_v43  ;;  %v3332_v58 = vpop.f32.mrb[8].mxu1 }
 0x104   : > { %v859_v34 = vmax.f32 %v637_v26, 0.0  ;;  %v762_v61 = vadd.f32 %v3332_v58, %v4021_v42  ;;  %v753_v62 = vpop.f32.mrb[9].mxu1 }
 0x105   : > { %v857_v37 = vmax.f32 %v629_v31, 0.0  ;;  %v754_v0 = vadd.f32 %v4021_v42, %v753_v62  ;;  %v3333_v1 = vpop.f32.mrb[10].mxu1 }
 0x106   : > { %v917_v41 = vpack.c.bf16 %v859_v34, %v858_v25  ;;  %v890_v3 = vmax.f32 %v762_v61, 0.0  ;;  %v765_v4 = vadd.f32 %v3333_v1, %v4021_v42  ;;  %v756_v5 = vpop.f32.mrb[11].mxu1 }
 0x107   : > { %v916_v45 = vpack.c.bf16 %v857_v37, %v856_v30  ;;  %v3304_v46 = vpop.f32.mrb[12].mxu0  ;;  %v888_v7 = vmax.f32 %v754_v0, 0.0  ;;  %v757_v8 = vadd.f32 %v4021_v42, %v756_v5 }
 0x108   : > { %v650_v48 = vadd.f32 %v3304_v46, %v4021_v42  ;;  %v641_v49 = vpop.f32.mrb[13].mxu0  ;;  %v891_v11 = vmax.f32 %v765_v4, 0.0 }
 0x109   : > { %v642_v51 = vadd.f32 %v4021_v42, %v641_v49  ;;  %v3305_v52 = vpop.f32.mrb[14].mxu0  ;;  %3370 = vmatprep.mubr.msk.bf16.mxu1 %vm983_vm3, %v916_v45  ;;  %v889_v14 = vmax.f32 %v757_v8, 0.0 }
 0x10a   : > { %v862_v54 = vmax.f32 %v650_v48, 0.0  ;;  %v653_v55 = vadd.f32 %v3305_v52, %v4021_v42  ;;  %v644_v56 = vpop.f32.mrb[15].mxu0  ;;  %3371 = vmatmul.mubr.msk.bf16.gmra.mrb[40].mxu1 %vm983_vm3, %v917_v41  ;;  %v4068_v17 = vpack.c.bf16 %v891_v11, %v890_v3 }
 0x10b   : > { %v860_v59 = vmax.f32 %v642_v51, 0.0  ;;  %v645_v60 = vadd.f32 %v4021_v42, %v644_v56  ;;  %v4072_v21 = vpack.c.bf16 %v889_v14, %v888_v7  ;;  %v3336_v22 = vpop.f32.mrb[12].mxu1 }
 0x10c   : > { %v863_v63 = vmax.f32 %v653_v55, 0.0  ;;  %v778_v26 = vadd.f32 %v3336_v22, %v4021_v42  ;;  %v769_v27 = vpop.f32.mrb[13].mxu1 }
 0x10d   : > { %v861_v2 = vmax.f32 %v645_v60, 0.0  ;;  %v770_v30 = vadd.f32 %v4021_v42, %v769_v27  ;;  %v3337_v31 = vpop.f32.mrb[14].mxu1 }
 0x10e   : > { %v919_v6 = vpack.c.bf16 %v863_v63, %v862_v54  ;;  %v894_v33 = vmax.f32 %v778_v26, 0.0  ;;  %v781_v34 = vadd.f32 %v3337_v31, %v4021_v42  ;;  %v772_v35 = vpop.f32.mrb[15].mxu1 }
 0x10f   : > { %v918_v9 = vpack.c.bf16 %v861_v2, %v860_v59  ;;  %v3308_v10 = vpop.f32.mrb[16].mxu0  ;;  %v892_v37 = vmax.f32 %v770_v30, 0.0  ;;  %v773_v38 = vadd.f32 %v4021_v42, %v772_v35 }
 0x110   : > { %v666_v12 = vadd.f32 %v3308_v10, %v4021_v42  ;;  %v657_v13 = vpop.f32.mrb[17].mxu0  ;;  %v895_v41 = vmax.f32 %v781_v34, 0.0 }
 0x111   : > { %v658_v15 = vadd.f32 %v4021_v42, %v657_v13  ;;  %v3309_v16 = vpop.f32.mrb[18].mxu0  ;;  %3374 = vmatprep.mubr.msk.bf16.mxu1 %vm983_vm3, %v918_v9  ;;  %v893_v45 = vmax.f32 %v773_v38, 0.0 }
 0x112   : > { %v866_v18 = vmax.f32 %v666_v12, 0.0  ;;  %v669_v19 = vadd.f32 %v3309_v16, %v4021_v42  ;;  %v660_v20 = vpop.f32.mrb[19].mxu0  ;;  %3375 = vmatmul.mubr.msk.bf16.gmra.mrb[44].mxu1 %vm983_vm3, %v919_v6  ;;  %v4082_v48 = vpack.c.bf16 %v895_v41, %v894_v33 }
 0x113   : > { %v864_v23 = vmax.f32 %v658_v15, 0.0  ;;  %v661_v25 = vadd.f32 %v4021_v42, %v660_v20  ;;  %v4086_v52 = vpack.c.bf16 %v893_v45, %v892_v37  ;;  %v3340_v54 = vpop.f32.mrb[16].mxu1 }
 0x114   : > { %v867_v29 = vmax.f32 %v669_v19, 0.0  ;;  %v794_v58 = vadd.f32 %v3340_v54, %v4021_v42  ;;  %v785_v59 = vpop.f32.mrb[17].mxu1 }
 0x115   : > { %v865_v32 = vmax.f32 %v661_v25, 0.0  ;;  %v786_v61 = vadd.f32 %v4021_v42, %v785_v59  ;;  %v3341_v62 = vpop.f32.mrb[18].mxu1 }
 0x116   : > { %v921_v36 = vpack.c.bf16 %v867_v29, %v866_v18  ;;  %v898_v0 = vmax.f32 %v794_v58, 0.0  ;;  %v797_v1 = vadd.f32 %v3341_v62, %v4021_v42  ;;  %v788_v2 = vpop.f32.mrb[19].mxu1 }
 0x117   : > { %v920_v39 = vpack.c.bf16 %v865_v32, %v864_v23  ;;  %v3312_v40 = vpop.f32.mrb[20].mxu0  ;;  %v896_v4 = vmax.f32 %v786_v61, 0.0  ;;  %v789_v5 = vadd.f32 %v4021_v42, %v788_v2 }
 0x118   : > { %v682_v43 = vadd.f32 %v3312_v40, %v4021_v42  ;;  %v673_v44 = vpop.f32.mrb[21].mxu0  ;;  %v899_v8 = vmax.f32 %v797_v1, 0.0 }
 0x119   : > { %v674_v46 = vadd.f32 %v4021_v42, %v673_v44  ;;  %v3313_v47 = vpop.f32.mrb[22].mxu0  ;;  %3378 = vmatprep.mubr.msk.bf16.mxu1 %vm983_vm3, %v920_v39  ;;  %v897_v11 = vmax.f32 %v789_v5, 0.0 }
 0x11a   : > { %v870_v49 = vmax.f32 %v682_v43, 0.0  ;;  %v685_v50 = vadd.f32 %v3313_v47, %v4021_v42  ;;  %v676_v51 = vpop.f32.mrb[23].mxu0  ;;  %3379 = vmatmul.mubr.msk.bf16.gmra.mrb[48].mxu1 %vm983_vm3, %v921_v36  ;;  %v4096_v14 = vpack.c.bf16 %v899_v8, %v898_v0 }
 0x11b   : > { %v868_v55 = vmax.f32 %v674_v46, 0.0  ;;  %v677_v56 = vadd.f32 %v4021_v42, %v676_v51  ;;  %v4100_v19 = vpack.c.bf16 %v897_v11, %v896_v4  ;;  %v3344_v20 = vpop.f32.mrb[20].mxu1 }
 0x11c   : > { %v871_v60 = vmax.f32 %v685_v50, 0.0  ;;  %v810_v25 = vadd.f32 %v3344_v20, %v4021_v42  ;;  %v801_v26 = vpop.f32.mrb[21].mxu1 }
 0x11d   : > { %v869_v63 = vmax.f32 %v677_v56, 0.0  ;;  %v802_v29 = vadd.f32 %v4021_v42, %v801_v26  ;;  %v3345_v30 = vpop.f32.mrb[22].mxu1 }
 0x11e   : > { %v923_v3 = vpack.c.bf16 %v871_v60, %v870_v49  ;;  %v902_v32 = vmax.f32 %v810_v25, 0.0  ;;  %v813_v33 = vadd.f32 %v3345_v30, %v4021_v42  ;;  %v804_v34 = vpop.f32.mrb[23].mxu1 }
 0x11f   : > { %v922_v6 = vpack.c.bf16 %v869_v63, %v868_v55  ;;  %v3316_v7 = vpop.f32.mrb[24].mxu0  ;;  %v900_v36 = vmax.f32 %v802_v29, 0.0  ;;  %v805_v37 = vadd.f32 %v4021_v42, %v804_v34 }
 0x120   : > { %v698_v9 = vadd.f32 %v3316_v7, %v4021_v42  ;;  %v689_v10 = vpop.f32.mrb[25].mxu0  ;;  %v903_v40 = vmax.f32 %v813_v33, 0.0 }
 0x121   : > { %v690_v12 = vadd.f32 %v4021_v42, %v689_v10  ;;  %v3317_v13 = vpop.f32.mrb[26].mxu0  ;;  %3382 = vmatprep.mubr.msk.bf16.mxu1 %vm983_vm3, %v922_v6  ;;  %v901_v44 = vmax.f32 %v805_v37, 0.0 }
 0x122   : > { %v874_v15 = vmax.f32 %v698_v9, 0.0  ;;  %v701_v16 = vadd.f32 %v3317_v13, %v4021_v42  ;;  %v692_v18 = vpop.f32.mrb[27].mxu0  ;;  %3383 = vmatmul.mubr.msk.bf16.gmra.mrb[52].mxu1 %vm983_vm3, %v923_v3  ;;  %v939_v47 = vpack.c.bf16 %v903_v40, %v902_v32 }
 0x123   : > { %v872_v22 = vmax.f32 %v690_v12, 0.0  ;;  %v693_v23 = vadd.f32 %v4021_v42, %v692_v18  ;;  %v938_v54 = vpack.c.bf16 %v901_v44, %v900_v36  ;;  %v3348_v55 = vpop.f32.mrb[24].mxu1 }
 0x124   : > { %v875_v27 = vmax.f32 %v701_v16, 0.0  ;;  %v826_v59 = vadd.f32 %v3348_v55, %v4021_v42  ;;  %v817_v60 = vpop.f32.mrb[25].mxu1 }
 0x125   : > { %v873_v31 = vmax.f32 %v693_v23, 0.0  ;;  %v818_v62 = vadd.f32 %v4021_v42, %v817_v60  ;;  %v3349_v63 = vpop.f32.mrb[26].mxu1 }
 0x126   : > { %v925_v35 = vpack.c.bf16 %v875_v27, %v874_v15  ;;  %v906_v1 = vmax.f32 %v826_v59, 0.0  ;;  %v829_v2 = vadd.f32 %v3349_v63, %v4021_v42  ;;  %v820_v3 = vpop.f32.mrb[27].mxu1 }
 0x127   : > { %v924_v38 = vpack.c.bf16 %v873_v31, %v872_v22  ;;  %v3320_v39 = vpop.f32.mrb[28].mxu0  ;;  %v904_v5 = vmax.f32 %v818_v62, 0.0  ;;  %v821_v6 = vadd.f32 %v4021_v42, %v820_v3 }
 0x128   : > { %v714_v41 = vadd.f32 %v3320_v39, %v4021_v42  ;;  %v705_v43 = vpop.f32.mrb[29].mxu0  ;;  %v907_v8 = vmax.f32 %v829_v2, 0.0 }
 0x129   : > { %v706_v45 = vadd.f32 %v4021_v42, %v705_v43  ;;  %v3321_v46 = vpop.f32.mrb[30].mxu0  ;;  %3386 = vmatprep.mubr.msk.bf16.mxu1 %vm983_vm3, %v924_v38  ;;  %v905_v9 = vmax.f32 %v821_v6, 0.0 }
 0x12a   : > { %v878_v49 = vmax.f32 %v714_v41, 0.0  ;;  %v717_v50 = vadd.f32 %v3321_v46, %v4021_v42  ;;  %v708_v51 = vpop.f32.mrb[31].mxu0  ;;  %3387 = vmatmul.mubr.msk.bf16.gmra.mrb[56].mxu1 %vm983_vm3, %v925_v35  ;;  %v941_v10 = vpack.c.bf16 %v907_v8, %v906_v1 }
 0x12b   : > { %v876_v56 = vmax.f32 %v706_v45, 0.0  ;;  %v709_v58 = vadd.f32 %v4021_v42, %v708_v51  ;;  %v940_v11 = vpack.c.bf16 %v905_v9, %v904_v5  ;;  %v3352_v12 = vpop.f32.mrb[28].mxu1 }
 0x12c   : > { %v879_v61 = vmax.f32 %v717_v50, 0.0  ;;  %v842_v13 = vadd.f32 %v3352_v12, %v4021_v42  ;;  %v833_v15 = vpop.f32.mrb[29].mxu1 }
 0x12d   : > { %v877_v0 = vmax.f32 %v709_v58, 0.0  ;;  %v834_v16 = vadd.f32 %v4021_v42, %v833_v15  ;;  %v3353_v18 = vpop.f32.mrb[30].mxu1 }
 0x12e   : > { %v927_v4 = vpack.c.bf16 %v879_v61, %v878_v49  ;;  %v910_v20 = vmax.f32 %v842_v13, 0.0  ;;  %v845_v22 = vadd.f32 %v3353_v18, %v4021_v42  ;;  %v836_v23 = vpop.f32.mrb[31].mxu1 }
 0x12f   : > { %v926_v7 = vpack.c.bf16 %v877_v0, %v876_v56  ;;  %v908_v25 = vmax.f32 %v834_v16, 0.0  ;;  %v837_v26 = vadd.f32 %v4021_v42, %v836_v23  ;;  %v3662_v42 = vld [vmem:[%s5035_s5] sm:$0xff]  }
 0x130   : > { %v911_v27 = vmax.f32 %v845_v22, 0.0  ;;  %3426 = vmatprep.subr.bf16.mxu0 %v3662_v42 }
 0x131   : > { %3390 = vmatprep.mubr.msk.bf16.mxu1 %vm983_vm3, %v926_v7  ;;  %v909_v29 = vmax.f32 %v837_v26, 0.0  ;;  %3427 = vmatpush3.bf16.msra.mxu0 %v3662_v42 }
 0x132   : > { %3391 = vmatmul.mubr.msk.bf16.gmra.mrb[60].mxu1 %vm983_vm3, %v927_v4  ;;  %v943_v30 = vpack.c.bf16 %v911_v27, %v910_v20 }
 0x133   : > { %3394 = vmatprep.mubr.msk.bf16.mxu1 %vm983_vm3, %v4044_v28  ;;  %v942_v28 = vpack.c.bf16 %v909_v29, %v908_v25 }
 0x13a   : > { %3395 = vmatmul.mubr.msk.bf16.gmra.mrb[64].mxu1 %vm983_vm3, %v4040_v24  ;;  %v3663_v24 = vld [vmem:[%s5035_s5 + $0x8] sm:$0xff]  }
 0x13b   : > { %3398 = vmatprep.mubr.msk.bf16.mxu1 %vm983_vm3, %v4058_v57  ;;  %3428 = vmatprep.subr.bf16.mxu0 %v3663_v24  ;;  %v3665_v57 = vld [vmem:[%s5035_s5 + $0x18] sm:$0xff]  }
 0x13c   : > { %3429 = vmatpush3.bf16.msra.mxu0 %v3663_v24 }
 0x142   : > { %3399 = vmatmul.mubr.msk.bf16.gmra.mrb[68].mxu1 %vm983_vm3, %v4054_v53  ;;  %v3664_v53 = vld [vmem:[%s5035_s5 + $0x10] sm:$0xff]  }
 0x143   : > { %3402 = vmatprep.mubr.msk.bf16.mxu1 %vm983_vm3, %v4072_v21  ;;  %3430 = vmatprep.subr.bf16.mxu0 %v3664_v53 }
 0x144   : > { %3431 = vmatpush3.bf16.msra.mxu0 %v3664_v53 }
 0x145   : > { %3432 = vmatprep.subr.bf16.mxu0 %v3665_v57 }
 0x148   : > { %3433 = vmatpush3.bf16.msra.mxu0 %v3665_v57 }
 0x14a   : > { %3403 = vmatmul.mubr.msk.bf16.gmra.mrb[72].mxu1 %vm983_vm3, %v4068_v17  ;;  %v4167_v17 = vld [vmem:[%s5034_s4] ss:$0 sm:$0xff] }
 0x14b   : > { %3406 = vmatprep.mubr.msk.bf16.mxu1 %vm983_vm3, %v4086_v52 }
 0x152   : > { %3407 = vmatmul.mubr.msk.bf16.gmra.mrb[76].mxu1 %vm983_vm3, %v4082_v48 }
 0x153   : > { %3410 = vmatprep.mubr.msk.bf16.mxu1 %vm983_vm3, %v4100_v19 }
 0x15a   : > { %3411 = vmatmul.mubr.msk.bf16.gmra.mrb[80].mxu1 %vm983_vm3, %v4096_v14 }
 0x15b   : > { %3414 = vmatprep.mubr.msk.bf16.mxu1 %vm983_vm3, %v938_v54 }
 0x162   : > { %3415 = vmatmul.mubr.msk.bf16.gmra.mrb[84].mxu1 %vm983_vm3, %v939_v47 }
 0x163   : > { %3418 = vmatprep.mubr.msk.bf16.mxu1 %vm983_vm3, %v940_v11 }
 0x16a   : > { %3419 = vmatmul.mubr.msk.bf16.gmra.mrb[88].mxu1 %vm983_vm3, %v941_v10 }
 0x16b   : > { %3422 = vmatprep.mubr.msk.bf16.mxu1 %vm983_vm3, %v942_v28 }
 0x172   : > { %3423 = vmatmul.mubr.msk.bf16.gmra.mrb[92].mxu1 %vm983_vm3, %v943_v30 }
 0x1cd   : > { %v3364_v21 = vpop.f32.mrb[32].mxu1 }
 0x1ce   : > { %v1123_v48 = vadd.f32 %v3364_v21, %v4167_v17  ;;  %v1114_v52 = vpop.f32.mrb[33].mxu1 }
 0x1cf   : > { %v1115_v14 = vadd.f32 %v4167_v17, %v1114_v52  ;;  %v3365_v19 = vpop.f32.mrb[34].mxu1 }
 0x1d0   : > { %1372 = vst.msk [vmem:[%s4172_s15 + $0x10] sm:$0xff] %vm1369_vm4, %v1123_v48  ;;  %v1126_v31 = vadd.f32 %v3365_v19, %v4167_v17  ;;  %v1117_v32 = vpop.f32.mrb[35].mxu1  ;;  %v1436_v34 = vmax.f32 %v1123_v48, 0.0 }
 0x1d1   : > { %1370 = vst.msk [vmem:[%s4172_s15] sm:$0xff] %vm1369_vm4, %v1115_v14  ;;  %v1118_v33 = vadd.f32 %v4167_v17, %v1117_v32  ;;  %v1434_v36 = vmax.f32 %v1115_v14, 0.0 }
 0x1d2   : > { %1373 = vst.msk [vmem:[%s4172_s15 + $0x18] sm:$0xff] %vm1369_vm4, %v1126_v31  ;;  %v1437_v35 = vmax.f32 %v1126_v31, 0.0 }
 0x1d3   : > { %1371 = vst.msk [vmem:[%s4172_s15 + $0x8] sm:$0xff] %vm1369_vm4, %v1118_v33  ;;  %v1435_v37 = vmax.f32 %v1118_v33, 0.0 }
 0x1d4   : > { %v1499_v38 = vpack.c.bf16 %v1437_v35, %v1436_v34 }
 0x1d5   : > { %v3368_v39 = vpop.f32.mrb[36].mxu1  ;;  %v1498_v40 = vpack.c.bf16 %v1435_v37, %v1434_v36 }
 0x1d6   : > { %v1139_v41 = vadd.f32 %v3368_v39, %v4167_v17  ;;  %v1130_v43 = vpop.f32.mrb[37].mxu1 }
 0x1d7   : > { %v1131_v44 = vadd.f32 %v4167_v17, %v1130_v43  ;;  %v3369_v45 = vpop.f32.mrb[38].mxu1  ;;  %1577 = vrot.lane.b32.xlu0 %v1498_v40, %s3819_s27 }
 0x1d8   : > { %1376 = vst.msk [vmem:[%s4172_s15 + $0x30] sm:$0xff] %vm1369_vm4, %v1139_v41  ;;  %v1142_v46 = vadd.f32 %v3369_v45, %v4167_v17  ;;  %v1133_v47 = vpop.f32.mrb[39].mxu1  ;;  %v1440_v50 = vmax.f32 %v1139_v41, 0.0 }
 0x1d9   : > { %1374 = vst.msk [vmem:[%s4172_s15 + $0x20] sm:$0xff] %vm1369_vm4, %v1131_v44  ;;  %v1134_v49 = vadd.f32 %v4167_v17, %v1133_v47  ;;  %v1438_v54 = vmax.f32 %v1131_v44, 0.0 }
 0x1da   : > { %1377 = vst.msk [vmem:[%s4172_s15 + $0x38] sm:$0xff] %vm1369_vm4, %v1142_v46  ;;  %v1441_v51 = vmax.f32 %v1142_v46, 0.0 }
 0x1db   : > { %1375 = vst.msk [vmem:[%s4172_s15 + $0x28] sm:$0xff] %vm1369_vm4, %v1134_v49  ;;  %v1439_v55 = vmax.f32 %v1134_v49, 0.0  ;;  %1579 = vrot.lane.b32.xlu0 %v1499_v38, %s3819_s27 }
 0x1dc   : > { %v1501_v56 = vpack.c.bf16 %v1441_v51, %v1440_v50 }
 0x1dd   : > { %v3372_v58 = vpop.f32.mrb[40].mxu1  ;;  %v1500_v59 = vpack.c.bf16 %v1439_v55, %v1438_v54 }
 0x1de   : > { %v1155_v60 = vadd.f32 %v3372_v58, %v4167_v17  ;;  %v1146_v61 = vpop.f32.mrb[41].mxu1 }
 0x1df   : > { %v1147_v62 = vadd.f32 %v4167_v17, %v1146_v61  ;;  %v3373_v63 = vpop.f32.mrb[42].mxu1  ;;  %1581 = vrot.lane.b32.xlu1 %v1500_v59, %s3819_s27 }
 0x1e0   : > { %1380 = vst.msk [vmem:[%s4172_s15 + $0x50] sm:$0xff] %vm1369_vm4, %v1155_v60  ;;  %v1158_v0 = vadd.f32 %v3373_v63, %v4167_v17  ;;  %v1149_v1 = vpop.f32.mrb[43].mxu1  ;;  %v1444_v3 = vmax.f32 %v1155_v60, 0.0 }
 0x1e1   : > { %1378 = vst.msk [vmem:[%s4172_s15 + $0x40] sm:$0xff] %vm1369_vm4, %v1147_v62  ;;  %v1150_v2 = vadd.f32 %v4167_v17, %v1149_v1  ;;  %v1442_v5 = vmax.f32 %v1147_v62, 0.0 }
 0x1e2   : > { %1381 = vst.msk [vmem:[%s4172_s15 + $0x58] sm:$0xff] %vm1369_vm4, %v1158_v0  ;;  %v1445_v4 = vmax.f32 %v1158_v0, 0.0 }
 0x1e3   : > { %1379 = vst.msk [vmem:[%s4172_s15 + $0x48] sm:$0xff] %vm1369_vm4, %v1150_v2  ;;  %v1443_v6 = vmax.f32 %v1150_v2, 0.0  ;;  %1583 = vrot.lane.b32.xlu1 %v1501_v56, %s3819_s27 }
 0x1e4   : > { %v1503_v7 = vpack.c.bf16 %v1445_v4, %v1444_v3 }
 0x1e5   : > { %v3376_v8 = vpop.f32.mrb[44].mxu1  ;;  %v1502_v9 = vpack.c.bf16 %v1443_v6, %v1442_v5 }
 0x1e6   : > { %v1171_v10 = vadd.f32 %v3376_v8, %v4167_v17  ;;  %v1162_v11 = vpop.f32.mrb[45].mxu1 }
 0x1e7   : > { %v1163_v12 = vadd.f32 %v4167_v17, %v1162_v11  ;;  %v3377_v13 = vpop.f32.mrb[46].mxu1  ;;  %1587 = vrot.lane.b32.xlu1 %v1503_v7, %s3819_s27  ;;  %1585 = vrot.lane.b32.xlu0 %v1502_v9, %s3819_s27 }
 0x1e8   : > { %1384 = vst.msk [vmem:[%s4172_s15 + $0x70] sm:$0xff] %vm1369_vm4, %v1171_v10  ;;  %v1174_v15 = vadd.f32 %v3377_v13, %v4167_v17  ;;  %v1165_v16 = vpop.f32.mrb[47].mxu1  ;;  %v1448_v20 = vmax.f32 %v1171_v10, 0.0 }
 0x1e9   : > { %1382 = vst.msk [vmem:[%s4172_s15 + $0x60] sm:$0xff] %vm1369_vm4, %v1163_v12  ;;  %v1166_v18 = vadd.f32 %v4167_v17, %v1165_v16  ;;  %v1446_v23 = vmax.f32 %v1163_v12, 0.0 }
 0x1ea   : > { %1385 = vst.msk [vmem:[%s4172_s15 + $0x78] sm:$0xff] %vm1369_vm4, %v1174_v15  ;;  %v1449_v22 = vmax.f32 %v1174_v15, 0.0 }
 0x1eb   : > { %1383 = vst.msk [vmem:[%s4172_s15 + $0x68] sm:$0xff] %vm1369_vm4, %v1166_v18  ;;  %v1447_v25 = vmax.f32 %v1166_v18, 0.0 }
 0x1ec   : > { %v1505_v26 = vpack.c.bf16 %v1449_v22, %v1448_v20 }
 0x1ed   : > { %v3380_v27 = vpop.f32.mrb[48].mxu1  ;;  %v1504_v29 = vpack.c.bf16 %v1447_v25, %v1446_v23 }
 0x1ee   : > { %v1187_v30 = vadd.f32 %v3380_v27, %v4167_v17  ;;  %v1178_v28 = vpop.f32.mrb[49].mxu1  ;;  %1591 = vrot.lane.b32.xlu1 %v1505_v26, %s3819_s27 }
 0x1ef   : > { %v1179_v42 = vadd.f32 %v4167_v17, %v1178_v28  ;;  %v3381_v24 = vpop.f32.mrb[50].mxu1  ;;  %1589 = vrot.lane.b32.xlu0 %v1504_v29, %s3819_s27 }
 0x1f0   : > { %1388 = vst.msk [vmem:[%s4172_s15 + $0x90] sm:$0xff] %vm1369_vm4, %v1187_v30  ;;  %v1190_v53 = vadd.f32 %v3381_v24, %v4167_v17  ;;  %v1181_v57 = vpop.f32.mrb[51].mxu1  ;;  %v1452_v48 = vmax.f32 %v1187_v30, 0.0 }
 0x1f1   : > { %1386 = vst.msk [vmem:[%s4172_s15 + $0x80] sm:$0xff] %vm1369_vm4, %v1179_v42  ;;  %v1182_v21 = vadd.f32 %v4167_v17, %v1181_v57  ;;  %v1450_v14 = vmax.f32 %v1179_v42, 0.0 }
 0x1f2   : > { %1389 = vst.msk [vmem:[%s4172_s15 + $0x98] sm:$0xff] %vm1369_vm4, %v1190_v53  ;;  %v1453_v52 = vmax.f32 %v1190_v53, 0.0 }
 0x1f3   : > { %1387 = vst.msk [vmem:[%s4172_s15 + $0x88] sm:$0xff] %vm1369_vm4, %v1182_v21  ;;  %v1451_v19 = vmax.f32 %v1182_v21, 0.0 }
 0x1f4   : > { %v1507_v31 = vpack.c.bf16 %v1453_v52, %v1452_v48 }
 0x1f5   : > { %v3384_v32 = vpop.f32.mrb[52].mxu1  ;;  %v1506_v33 = vpack.c.bf16 %v1451_v19, %v1450_v14 }
 0x1f6   : > { %v1203_v34 = vadd.f32 %v3384_v32, %v4167_v17  ;;  %v1194_v35 = vpop.f32.mrb[53].mxu1  ;;  %1595 = vrot.lane.b32.xlu1 %v1507_v31, %s3819_s27 }
 0x1f7   : > { %v1195_v36 = vadd.f32 %v4167_v17, %v1194_v35  ;;  %v3385_v37 = vpop.f32.mrb[54].mxu1  ;;  %1593 = vrot.lane.b32.xlu0 %v1506_v33, %s3819_s27 }
 0x1f8   : > { %1392 = vst.msk [vmem:[%s4172_s15 + $0xb0] sm:$0xff] %vm1369_vm4, %v1203_v34  ;;  %v1206_v38 = vadd.f32 %v3385_v37, %v4167_v17  ;;  %v1197_v39 = vpop.f32.mrb[55].mxu1  ;;  %v1456_v41 = vmax.f32 %v1203_v34, 0.0 }
 0x1f9   : > { %1390 = vst.msk [vmem:[%s4172_s15 + $0xa0] sm:$0xff] %vm1369_vm4, %v1195_v36  ;;  %v1198_v40 = vadd.f32 %v4167_v17, %v1197_v39  ;;  %v1454_v44 = vmax.f32 %v1195_v36, 0.0 }
 0x1fa   : > { %1393 = vst.msk [vmem:[%s4172_s15 + $0xb8] sm:$0xff] %vm1369_vm4, %v1206_v38  ;;  %v1457_v43 = vmax.f32 %v1206_v38, 0.0 }
 0x1fb   : > { %1391 = vst.msk [vmem:[%s4172_s15 + $0xa8] sm:$0xff] %vm1369_vm4, %v1198_v40  ;;  %v1455_v45 = vmax.f32 %v1198_v40, 0.0 }
 0x1fc   : > { %v1509_v46 = vpack.c.bf16 %v1457_v43, %v1456_v41 }
 0x1fd   : > { %v3388_v47 = vpop.f32.mrb[56].mxu1  ;;  %v1508_v49 = vpack.c.bf16 %v1455_v45, %v1454_v44 }
 0x1fe   : > { %v1219_v50 = vadd.f32 %v3388_v47, %v4167_v17  ;;  %v1210_v51 = vpop.f32.mrb[57].mxu1  ;;  %1599 = vrot.lane.b32.xlu1 %v1509_v46, %s3819_s27 }
 0x1ff   : > { %v1211_v54 = vadd.f32 %v4167_v17, %v1210_v51  ;;  %v3389_v55 = vpop.f32.mrb[58].mxu1  ;;  %1597 = vrot.lane.b32.xlu0 %v1508_v49, %s3819_s27 }
 0x200   : > { %1396 = vst.msk [vmem:[%s4172_s15 + $0xd0] sm:$0xff] %vm1369_vm4, %v1219_v50  ;;  %v1222_v56 = vadd.f32 %v3389_v55, %v4167_v17  ;;  %v1213_v58 = vpop.f32.mrb[59].mxu1  ;;  %v1460_v60 = vmax.f32 %v1219_v50, 0.0 }
 0x201   : > { %1394 = vst.msk [vmem:[%s4172_s15 + $0xc0] sm:$0xff] %vm1369_vm4, %v1211_v54  ;;  %v1214_v59 = vadd.f32 %v4167_v17, %v1213_v58  ;;  %v1458_v62 = vmax.f32 %v1211_v54, 0.0 }
 0x202   : > { %1397 = vst.msk [vmem:[%s4172_s15 + $0xd8] sm:$0xff] %vm1369_vm4, %v1222_v56  ;;  %v1461_v61 = vmax.f32 %v1222_v56, 0.0 }
 0x203   : > { %1395 = vst.msk [vmem:[%s4172_s15 + $0xc8] sm:$0xff] %vm1369_vm4, %v1214_v59  ;;  %v1459_v63 = vmax.f32 %v1214_v59, 0.0 }
 0x204   : > { %v1511_v0 = vpack.c.bf16 %v1461_v61, %v1460_v60 }
 0x205   : > { %v3392_v1 = vpop.f32.mrb[60].mxu1  ;;  %v1510_v2 = vpack.c.bf16 %v1459_v63, %v1458_v62 }
 0x206   : > { %v1235_v3 = vadd.f32 %v3392_v1, %v4167_v17  ;;  %v1226_v4 = vpop.f32.mrb[61].mxu1  ;;  %1603 = vrot.lane.b32.xlu1 %v1511_v0, %s3819_s27 }
 0x207   : > { %v1227_v5 = vadd.f32 %v4167_v17, %v1226_v4  ;;  %v3393_v6 = vpop.f32.mrb[62].mxu1  ;;  %1601 = vrot.lane.b32.xlu0 %v1510_v2, %s3819_s27 }
 0x208   : > { %1400 = vst.msk [vmem:[%s4172_s15 + $0xf0] sm:$0xff] %vm1369_vm4, %v1235_v3  ;;  %v1238_v7 = vadd.f32 %v3393_v6, %v4167_v17  ;;  %v1229_v8 = vpop.f32.mrb[63].mxu1  ;;  %v1464_v10 = vmax.f32 %v1235_v3, 0.0 }
 0x209   : > { %1398 = vst.msk [vmem:[%s4172_s15 + $0xe0] sm:$0xff] %vm1369_vm4, %v1227_v5  ;;  %v1230_v9 = vadd.f32 %v4167_v17, %v1229_v8  ;;  %v1462_v12 = vmax.f32 %v1227_v5, 0.0 }
 0x20a   : > { %1401 = vst.msk [vmem:[%s4172_s15 + $0xf8] sm:$0xff] %vm1369_vm4, %v1238_v7  ;;  %v1465_v11 = vmax.f32 %v1238_v7, 0.0 }
 0x20b   : > { %1399 = vst.msk [vmem:[%s4172_s15 + $0xe8] sm:$0xff] %vm1369_vm4, %v1230_v9  ;;  %v1463_v13 = vmax.f32 %v1230_v9, 0.0 }
 0x20c   : > { %v1513_v15 = vpack.c.bf16 %v1465_v11, %v1464_v10 }
 0x20d   : > { %v3396_v16 = vpop.f32.mrb[64].mxu1  ;;  %v1512_v18 = vpack.c.bf16 %v1463_v13, %v1462_v12 }
 0x20e   : > { %v1251_v20 = vadd.f32 %v3396_v16, %v4167_v17  ;;  %v1242_v22 = vpop.f32.mrb[65].mxu1  ;;  %1607 = vrot.lane.b32.xlu1 %v1513_v15, %s3819_s27 }
 0x20f   : > { %v1243_v23 = vadd.f32 %v4167_v17, %v1242_v22  ;;  %v3397_v25 = vpop.f32.mrb[66].mxu1  ;;  %1605 = vrot.lane.b32.xlu0 %v1512_v18, %s3819_s27 }
 0x210   : > { %1404 = vst.msk [vmem:[%s4172_s15 + $0x110] sm:$0xff] %vm1369_vm4, %v1251_v20  ;;  %v1254_v26 = vadd.f32 %v3397_v25, %v4167_v17  ;;  %v1245_v27 = vpop.f32.mrb[67].mxu1  ;;  %v1468_v30 = vmax.f32 %v1251_v20, 0.0 }
 0x211   : > { %1402 = vst.msk [vmem:[%s4172_s15 + $0x100] sm:$0xff] %vm1369_vm4, %v1243_v23  ;;  %v1246_v29 = vadd.f32 %v4167_v17, %v1245_v27  ;;  %v1466_v42 = vmax.f32 %v1243_v23, 0.0 }
 0x212   : > { %1405 = vst.msk [vmem:[%s4172_s15 + $0x118] sm:$0xff] %vm1369_vm4, %v1254_v26  ;;  %v1469_v28 = vmax.f32 %v1254_v26, 0.0 }
 0x213   : > { %1403 = vst.msk [vmem:[%s4172_s15 + $0x108] sm:$0xff] %vm1369_vm4, %v1246_v29  ;;  %v1467_v24 = vmax.f32 %v1246_v29, 0.0 }
 0x214   : > { %v1515_v53 = vpack.c.bf16 %v1469_v28, %v1468_v30 }
 0x215   : > { %v3400_v57 = vpop.f32.mrb[68].mxu1  ;;  %v1514_v21 = vpack.c.bf16 %v1467_v24, %v1466_v42 }
 0x216   : > { %v1267_v48 = vadd.f32 %v3400_v57, %v4167_v17  ;;  %v1258_v52 = vpop.f32.mrb[69].mxu1  ;;  %1611 = vrot.lane.b32.xlu1 %v1515_v53, %s3819_s27 }
 0x217   : > { %v1259_v14 = vadd.f32 %v4167_v17, %v1258_v52  ;;  %v3401_v19 = vpop.f32.mrb[70].mxu1  ;;  %1609 = vrot.lane.b32.xlu0 %v1514_v21, %s3819_s27 }
 0x218   : > { %1408 = vst.msk [vmem:[%s4172_s15 + $0x130] sm:$0xff] %vm1369_vm4, %v1267_v48  ;;  %v1270_v31 = vadd.f32 %v3401_v19, %v4167_v17  ;;  %v1261_v32 = vpop.f32.mrb[71].mxu1  ;;  %v1472_v34 = vmax.f32 %v1267_v48, 0.0 }
 0x219   : > { %1406 = vst.msk [vmem:[%s4172_s15 + $0x120] sm:$0xff] %vm1369_vm4, %v1259_v14  ;;  %v1262_v33 = vadd.f32 %v4167_v17, %v1261_v32  ;;  %v1470_v36 = vmax.f32 %v1259_v14, 0.0 }
 0x21a   : > { %1409 = vst.msk [vmem:[%s4172_s15 + $0x138] sm:$0xff] %vm1369_vm4, %v1270_v31  ;;  %v1473_v35 = vmax.f32 %v1270_v31, 0.0 }
 0x21b   : > { %1407 = vst.msk [vmem:[%s4172_s15 + $0x128] sm:$0xff] %vm1369_vm4, %v1262_v33  ;;  %v1471_v37 = vmax.f32 %v1262_v33, 0.0 }
 0x21c   : > { %v1517_v38 = vpack.c.bf16 %v1473_v35, %v1472_v34 }
 0x21d   : > { %v3404_v39 = vpop.f32.mrb[72].mxu1  ;;  %v1516_v40 = vpack.c.bf16 %v1471_v37, %v1470_v36 }
 0x21e   : > { %v1283_v41 = vadd.f32 %v3404_v39, %v4167_v17  ;;  %v1274_v43 = vpop.f32.mrb[73].mxu1  ;;  %1615 = vrot.lane.b32.xlu1 %v1517_v38, %s3819_s27 }
 0x21f   : > { %v1275_v44 = vadd.f32 %v4167_v17, %v1274_v43  ;;  %v3405_v45 = vpop.f32.mrb[74].mxu1  ;;  %1613 = vrot.lane.b32.xlu0 %v1516_v40, %s3819_s27 }
 0x220   : > { %1412 = vst.msk [vmem:[%s4172_s15 + $0x150] sm:$0xff] %vm1369_vm4, %v1283_v41  ;;  %v1286_v46 = vadd.f32 %v3405_v45, %v4167_v17  ;;  %v1277_v47 = vpop.f32.mrb[75].mxu1  ;;  %v1476_v50 = vmax.f32 %v1283_v41, 0.0 }
 0x221   : > { %1410 = vst.msk [vmem:[%s4172_s15 + $0x140] sm:$0xff] %vm1369_vm4, %v1275_v44  ;;  %v1278_v49 = vadd.f32 %v4167_v17, %v1277_v47  ;;  %v1474_v54 = vmax.f32 %v1275_v44, 0.0 }
 0x222   : > { %1413 = vst.msk [vmem:[%s4172_s15 + $0x158] sm:$0xff] %vm1369_vm4, %v1286_v46  ;;  %v1477_v51 = vmax.f32 %v1286_v46, 0.0 }
 0x223   : > { %1411 = vst.msk [vmem:[%s4172_s15 + $0x148] sm:$0xff] %vm1369_vm4, %v1278_v49  ;;  %v1475_v55 = vmax.f32 %v1278_v49, 0.0 }
 0x224   : > { %v1519_v56 = vpack.c.bf16 %v1477_v51, %v1476_v50 }
 0x225   : > { %v3408_v58 = vpop.f32.mrb[76].mxu1  ;;  %v1518_v59 = vpack.c.bf16 %v1475_v55, %v1474_v54 }
 0x226   : > { %v1299_v60 = vadd.f32 %v3408_v58, %v4167_v17  ;;  %v1290_v61 = vpop.f32.mrb[77].mxu1  ;;  %1619 = vrot.lane.b32.xlu1 %v1519_v56, %s3819_s27 }
 0x227   : > { %v1291_v62 = vadd.f32 %v4167_v17, %v1290_v61  ;;  %v3409_v63 = vpop.f32.mrb[78].mxu1  ;;  %1617 = vrot.lane.b32.xlu0 %v1518_v59, %s3819_s27 }
 0x228   : > { %1416 = vst.msk [vmem:[%s4172_s15 + $0x170] sm:$0xff] %vm1369_vm4, %v1299_v60  ;;  %v1302_v0 = vadd.f32 %v3409_v63, %v4167_v17  ;;  %v1293_v1 = vpop.f32.mrb[79].mxu1  ;;  %v1480_v3 = vmax.f32 %v1299_v60, 0.0 }
 0x229   : > { %1414 = vst.msk [vmem:[%s4172_s15 + $0x160] sm:$0xff] %vm1369_vm4, %v1291_v62  ;;  %v1294_v2 = vadd.f32 %v4167_v17, %v1293_v1  ;;  %v1478_v5 = vmax.f32 %v1291_v62, 0.0 }
 0x22a   : > { %1417 = vst.msk [vmem:[%s4172_s15 + $0x178] sm:$0xff] %vm1369_vm4, %v1302_v0  ;;  %v1481_v4 = vmax.f32 %v1302_v0, 0.0 }
 0x22b   : > { %1415 = vst.msk [vmem:[%s4172_s15 + $0x168] sm:$0xff] %vm1369_vm4, %v1294_v2  ;;  %v1479_v6 = vmax.f32 %v1294_v2, 0.0 }
 0x22c   : > { %v1521_v7 = vpack.c.bf16 %v1481_v4, %v1480_v3 }
 0x22d   : > { %v3412_v8 = vpop.f32.mrb[80].mxu1  ;;  %v1520_v9 = vpack.c.bf16 %v1479_v6, %v1478_v5 }
 0x22e   : > { %v1315_v10 = vadd.f32 %v3412_v8, %v4167_v17  ;;  %v1306_v11 = vpop.f32.mrb[81].mxu1  ;;  %1623 = vrot.lane.b32.xlu1 %v1521_v7, %s3819_s27 }
 0x22f   : > { %v1307_v12 = vadd.f32 %v4167_v17, %v1306_v11  ;;  %v3413_v13 = vpop.f32.mrb[82].mxu1  ;;  %1621 = vrot.lane.b32.xlu0 %v1520_v9, %s3819_s27 }
 0x230   : > { %1420 = vst.msk [vmem:[%s4172_s15 + $0x190] sm:$0xff] %vm1369_vm4, %v1315_v10  ;;  %v1318_v15 = vadd.f32 %v3413_v13, %v4167_v17  ;;  %v1309_v16 = vpop.f32.mrb[83].mxu1  ;;  %v1484_v20 = vmax.f32 %v1315_v10, 0.0 }
 0x231   : > { %1418 = vst.msk [vmem:[%s4172_s15 + $0x180] sm:$0xff] %vm1369_vm4, %v1307_v12  ;;  %v1310_v18 = vadd.f32 %v4167_v17, %v1309_v16  ;;  %v1482_v23 = vmax.f32 %v1307_v12, 0.0 }
 0x232   : > { %1421 = vst.msk [vmem:[%s4172_s15 + $0x198] sm:$0xff] %vm1369_vm4, %v1318_v15  ;;  %v1485_v22 = vmax.f32 %v1318_v15, 0.0 }
 0x233   : > { %1419 = vst.msk [vmem:[%s4172_s15 + $0x188] sm:$0xff] %vm1369_vm4, %v1310_v18  ;;  %v1483_v25 = vmax.f32 %v1310_v18, 0.0 }
 0x234   : > { %v1523_v26 = vpack.c.bf16 %v1485_v22, %v1484_v20 }
 0x235   : > { %v3416_v27 = vpop.f32.mrb[84].mxu1  ;;  %v1522_v29 = vpack.c.bf16 %v1483_v25, %v1482_v23 }
 0x236   : > { %v1331_v30 = vadd.f32 %v3416_v27, %v4167_v17  ;;  %v1322_v28 = vpop.f32.mrb[85].mxu1  ;;  %1627 = vrot.lane.b32.xlu1 %v1523_v26, %s3819_s27 }
 0x237   : > { %v1323_v42 = vadd.f32 %v4167_v17, %v1322_v28  ;;  %v3417_v24 = vpop.f32.mrb[86].mxu1  ;;  %1625 = vrot.lane.b32.xlu0 %v1522_v29, %s3819_s27 }
 0x238   : > { %1424 = vst.msk [vmem:[%s4172_s15 + $0x1b0] sm:$0xff] %vm1369_vm4, %v1331_v30  ;;  %v1334_v53 = vadd.f32 %v3417_v24, %v4167_v17  ;;  %v1325_v57 = vpop.f32.mrb[87].mxu1  ;;  %v1488_v48 = vmax.f32 %v1331_v30, 0.0 }
 0x239   : > { %1422 = vst.msk [vmem:[%s4172_s15 + $0x1a0] sm:$0xff] %vm1369_vm4, %v1323_v42  ;;  %v1326_v21 = vadd.f32 %v4167_v17, %v1325_v57  ;;  %v1486_v14 = vmax.f32 %v1323_v42, 0.0 }
 0x23a   : > { %1425 = vst.msk [vmem:[%s4172_s15 + $0x1b8] sm:$0xff] %vm1369_vm4, %v1334_v53  ;;  %v1489_v52 = vmax.f32 %v1334_v53, 0.0 }
 0x23b   : > { %1423 = vst.msk [vmem:[%s4172_s15 + $0x1a8] sm:$0xff] %vm1369_vm4, %v1326_v21  ;;  %v1487_v19 = vmax.f32 %v1326_v21, 0.0 }
 0x23c   : > { %v1525_v31 = vpack.c.bf16 %v1489_v52, %v1488_v48 }
 0x23d   : > { %v3420_v32 = vpop.f32.mrb[88].mxu1  ;;  %v1524_v33 = vpack.c.bf16 %v1487_v19, %v1486_v14  ;;  %v4431_v14 = vld [vmem:[%s5036_s6] ss:$0 sm:$0xff] }
 0x23e   : > { %v1347_v34 = vadd.f32 %v3420_v32, %v4167_v17  ;;  %v1338_v35 = vpop.f32.mrb[89].mxu1  ;;  %1631 = vrot.lane.b32.xlu1 %v1525_v31, %s3819_s27 }
 0x23f   : > { %v1339_v36 = vadd.f32 %v4167_v17, %v1338_v35  ;;  %v3421_v37 = vpop.f32.mrb[90].mxu1  ;;  %1629 = vrot.lane.b32.xlu0 %v1524_v33, %s3819_s27 }
 0x240   : > { %1428 = vst.msk [vmem:[%s4172_s15 + $0x1d0] sm:$0xff] %vm1369_vm4, %v1347_v34  ;;  %v1350_v38 = vadd.f32 %v3421_v37, %v4167_v17  ;;  %v1341_v39 = vpop.f32.mrb[91].mxu1  ;;  %v1492_v41 = vmax.f32 %v1347_v34, 0.0 }
 0x241   : > { %1426 = vst.msk [vmem:[%s4172_s15 + $0x1c0] sm:$0xff] %vm1369_vm4, %v1339_v36  ;;  %v1342_v40 = vadd.f32 %v4167_v17, %v1341_v39  ;;  %v1490_v44 = vmax.f32 %v1339_v36, 0.0 }
 0x242   : > { %1429 = vst.msk [vmem:[%s4172_s15 + $0x1d8] sm:$0xff] %vm1369_vm4, %v1350_v38  ;;  %v1493_v43 = vmax.f32 %v1350_v38, 0.0 }
 0x243   : > { %1427 = vst.msk [vmem:[%s4172_s15 + $0x1c8] sm:$0xff] %vm1369_vm4, %v1342_v40  ;;  %v1491_v45 = vmax.f32 %v1342_v40, 0.0 }
 0x244   : > { %v1527_v46 = vpack.c.bf16 %v1493_v43, %v1492_v41 }
 0x245   : > { %v3424_v47 = vpop.f32.mrb[92].mxu1  ;;  %v1526_v49 = vpack.c.bf16 %v1491_v45, %v1490_v44 }
 0x246   : > { %v1363_v50 = vadd.f32 %v3424_v47, %v4167_v17  ;;  %v1354_v51 = vpop.f32.mrb[93].mxu1  ;;  %1635 = vrot.lane.b32.xlu1 %v1527_v46, %s3819_s27 }
 0x247   : > { %v1355_v54 = vadd.f32 %v4167_v17, %v1354_v51  ;;  %v3425_v55 = vpop.f32.mrb[94].mxu1  ;;  %1633 = vrot.lane.b32.xlu0 %v1526_v49, %s3819_s27 }
 0x248   : > { %1432 = vst.msk [vmem:[%s4172_s15 + $0x1f0] sm:$0xff] %vm1369_vm4, %v1363_v50  ;;  %v1366_v56 = vadd.f32 %v3425_v55, %v4167_v17  ;;  %v1357_v58 = vpop.f32.mrb[95].mxu1  ;;  %v1496_v61 = vmax.f32 %v1363_v50, 0.0 }
 0x249   : > { %1430 = vst.msk [vmem:[%s4172_s15 + $0x1e0] sm:$0xff] %vm1369_vm4, %v1355_v54  ;;  %v1358_v59 = vadd.f32 %v4167_v17, %v1357_v58  ;;  %v1578_v60 = vpop.permute.xlu0 %1577  ;;  %v1494_v63 = vmax.f32 %v1355_v54, 0.0 }
 0x24a   : > { %1433 = vst.msk [vmem:[%s4172_s15 + $0x1f8] sm:$0xff] %vm1369_vm4, %v1366_v56  ;;  %v1497_v62 = vmax.f32 %v1366_v56, 0.0  ;;  %3434 = vmatprep.mubr.msk.bf16.mxu0 %vm983_vm3, %v1578_v60 }
 0x24b   : > { %1431 = vst.msk [vmem:[%s4172_s15 + $0x1e8] sm:$0xff] %vm1369_vm4, %v1358_v59  ;;  %v1495_v0 = vmax.f32 %v1358_v59, 0.0 }
 0x24c   : > { %v1529_v1 = vpack.c.bf16 %v1497_v62, %v1496_v61 }
 0x24d   : > { %v1580_v2 = vpop.permute.xlu0 %1579  ;;  %v1528_v3 = vpack.c.bf16 %v1495_v0, %v1494_v63 }
 0x24e   : > { %1639 = vrot.lane.b32.xlu1 %v1529_v1, %s3819_s27  ;;  %3435 = vmatmul.mubr.msk.bf16.vlgmr.msra.gmra.mrb[32].mxu0 %vm983_vm3, %v1580_v2 }
 0x24f   : > { %1637 = vrot.lane.b32.xlu0 %v1528_v3, %s3819_s27 }
 0x251   : > { %v1582_v17 = vpop.permute.xlu1 %1581 }
 0x252   : > { %3438 = vmatprep.mubr.msk.bf16.mxu0 %vm983_vm3, %v1582_v17 }
 0x255   : > { %v1584_v4 = vpop.permute.xlu1 %1583 }
 0x256   : > { %3439 = vmatmul.mubr.msk.bf16.gmra.mrb[36].mxu0 %vm983_vm3, %v1584_v4 }
 0x259   : > { %v1586_v5 = vpop.permute.xlu0 %1585  ;;  %v1588_v6 = vpop.permute.xlu1 %1587 }
 0x25a   : > { %3442 = vmatprep.mubr.msk.bf16.mxu0 %vm983_vm3, %v1586_v5 }
 0x25e   : > { %3443 = vmatmul.mubr.msk.bf16.gmra.mrb[40].mxu0 %vm983_vm3, %v1588_v6 }
 0x260   : > { %v1592_v8 = vpop.permute.xlu1 %1591 }
 0x261   : > { %v1590_v7 = vpop.permute.xlu0 %1589 }
 0x262   : > { %3446 = vmatprep.mubr.msk.bf16.mxu0 %vm983_vm3, %v1590_v7 }
 0x266   : > { %3447 = vmatmul.mubr.msk.bf16.gmra.mrb[44].mxu0 %vm983_vm3, %v1592_v8 }
 0x268   : > { %v1596_v10 = vpop.permute.xlu1 %1595 }
 0x269   : > { %v1594_v9 = vpop.permute.xlu0 %1593 }
 0x26a   : > { %3450 = vmatprep.mubr.msk.bf16.mxu0 %vm983_vm3, %v1594_v9 }
 0x26e   : > { %3451 = vmatmul.mubr.msk.bf16.gmra.mrb[48].mxu0 %vm983_vm3, %v1596_v10 }
 0x270   : > { %v1600_v12 = vpop.permute.xlu1 %1599 }
 0x271   : > { %v1598_v11 = vpop.permute.xlu0 %1597 }
 0x272   : > { %3454 = vmatprep.mubr.msk.bf16.mxu0 %vm983_vm3, %v1598_v11 }
 0x276   : > { %3455 = vmatmul.mubr.msk.bf16.gmra.mrb[52].mxu0 %vm983_vm3, %v1600_v12 }
 0x278   : > { %v1604_v15 = vpop.permute.xlu1 %1603 }
 0x279   : > { %v1602_v13 = vpop.permute.xlu0 %1601 }
 0x27a   : > { %3458 = vmatprep.mubr.msk.bf16.mxu0 %vm983_vm3, %v1602_v13 }
 0x27e   : > { %3459 = vmatmul.mubr.msk.bf16.gmra.mrb[56].mxu0 %vm983_vm3, %v1604_v15 }
 0x280   : > { %v1608_v18 = vpop.permute.xlu1 %1607 }
 0x281   : > { %v1606_v16 = vpop.permute.xlu0 %1605 }
 0x282   : > { %3462 = vmatprep.mubr.msk.bf16.mxu0 %vm983_vm3, %v1606_v16 }
 0x286   : > { %3463 = vmatmul.mubr.msk.bf16.gmra.mrb[60].mxu0 %vm983_vm3, %v1608_v18 }
 0x288   : > { %v1612_v22 = vpop.permute.xlu1 %1611 }
 0x289   : > { %v1610_v20 = vpop.permute.xlu0 %1609 }
 0x28a   : > { %3466 = vmatprep.mubr.msk.bf16.mxu0 %vm983_vm3, %v1610_v20 }
 0x28e   : > { %3467 = vmatmul.mubr.msk.bf16.gmra.mrb[64].mxu0 %vm983_vm3, %v1612_v22 }
 0x290   : > { %v1616_v25 = vpop.permute.xlu1 %1615 }
 0x291   : > { %v1614_v23 = vpop.permute.xlu0 %1613 }
 0x292   : > { %3470 = vmatprep.mubr.msk.bf16.mxu0 %vm983_vm3, %v1614_v23 }
 0x296   : > { %3471 = vmatmul.mubr.msk.bf16.gmra.mrb[68].mxu0 %vm983_vm3, %v1616_v25 }
 0x298   : > { %v1620_v27 = vpop.permute.xlu1 %1619 }
 0x299   : > { %v1618_v26 = vpop.permute.xlu0 %1617 }
 0x29a   : > { %3474 = vmatprep.mubr.msk.bf16.mxu0 %vm983_vm3, %v1618_v26 }
 0x29e   : > { %3475 = vmatmul.mubr.msk.bf16.gmra.mrb[72].mxu0 %vm983_vm3, %v1620_v27 }
 0x2a0   : > { %v1624_v30 = vpop.permute.xlu1 %1623 }
 0x2a1   : > { %v1622_v29 = vpop.permute.xlu0 %1621 }
 0x2a2   : > { %3478 = vmatprep.mubr.msk.bf16.mxu0 %vm983_vm3, %v1622_v29 }
 0x2a6   : > { %3479 = vmatmul.mubr.msk.bf16.gmra.mrb[76].mxu0 %vm983_vm3, %v1624_v30 }
 0x2a8   : > { %v1628_v42 = vpop.permute.xlu1 %1627 }
 0x2a9   : > { %v1626_v28 = vpop.permute.xlu0 %1625 }
 0x2aa   : > { %3482 = vmatprep.mubr.msk.bf16.mxu0 %vm983_vm3, %v1626_v28 }
 0x2ae   : > { %3483 = vmatmul.mubr.msk.bf16.gmra.mrb[80].mxu0 %vm983_vm3, %v1628_v42 }
 0x2b0   : > { %v1632_v53 = vpop.permute.xlu1 %1631 }
 0x2b1   : > { %v1630_v24 = vpop.permute.xlu0 %1629 }
 0x2b2   : > { %3486 = vmatprep.mubr.msk.bf16.mxu0 %vm983_vm3, %v1630_v24 }
 0x2b6   : > { %3487 = vmatmul.mubr.msk.bf16.gmra.mrb[84].mxu0 %vm983_vm3, %v1632_v53 }
 0x2b8   : > { %v1636_v21 = vpop.permute.xlu1 %1635 }
 0x2b9   : > { %v1634_v57 = vpop.permute.xlu0 %1633 }
 0x2ba   : > { %3490 = vmatprep.mubr.msk.bf16.mxu0 %vm983_vm3, %v1634_v57 }
 0x2be   : > { %3491 = vmatmul.mubr.msk.bf16.gmra.mrb[88].mxu0 %vm983_vm3, %v1636_v21 }
 0x2c0   : > { %v1640_v52 = vpop.permute.xlu1 %1639 }
 0x2c1   : > { %v1638_v48 = vpop.permute.xlu0 %1637 }
 0x2c2   : > { %3494 = vmatprep.mubr.msk.bf16.mxu0 %vm983_vm3, %v1638_v48 }
 0x2c6   : > { %3495 = vmatmul.mubr.msk.bf16.gmra.mrb[92].mxu0 %vm983_vm3, %v1640_v52 }
 0x321   : > { %v3436_v19 = vpop.f32.mrb[32].mxu0 }
 0x322   : > { %v1804_v31 = vadd.f32 %v3436_v19, %v4431_v14  ;;  %v1795_v32 = vpop.f32.mrb[33].mxu0 }
 0x323   : > { %v1796_v33 = vadd.f32 %v4431_v14, %v1795_v32  ;;  %v3437_v34 = vpop.f32.mrb[34].mxu0 }
 0x324   : > { %2052 = vst.msk [vmem:[%s4436_s19 + $0x10] sm:$0xff] %vm455_vm2, %v1804_v31  ;;  %v1807_v35 = vadd.f32 %v3437_v34, %v4431_v14  ;;  %v1798_v36 = vpop.f32.mrb[35].mxu0 }
 0x325   : > { %2050 = vst.msk [vmem:[%s4436_s19] sm:$0xff] %vm455_vm2, %v1796_v33  ;;  %v1799_v37 = vadd.f32 %v4431_v14, %v1798_v36 }
 0x326   : > { %2053 = vst.msk [vmem:[%s4436_s19 + $0x18] sm:$0xff] %vm455_vm2, %v1807_v35 }
 0x327   : > { %2051 = vst.msk [vmem:[%s4436_s19 + $0x8] sm:$0xff] %vm455_vm2, %v1799_v37 }
 0x329   : > { %v3440_v38 = vpop.f32.mrb[36].mxu0 }
 0x32a   : > { %v1820_v39 = vadd.f32 %v3440_v38, %v4431_v14  ;;  %v1811_v40 = vpop.f32.mrb[37].mxu0 }
 0x32b   : > { %v1812_v41 = vadd.f32 %v4431_v14, %v1811_v40  ;;  %v3441_v43 = vpop.f32.mrb[38].mxu0 }
 0x32c   : > { %2056 = vst.msk [vmem:[%s4436_s19 + $0x30] sm:$0xff] %vm455_vm2, %v1820_v39  ;;  %v1823_v44 = vadd.f32 %v3441_v43, %v4431_v14  ;;  %v1814_v45 = vpop.f32.mrb[39].mxu0 }
 0x32d   : > { %2054 = vst.msk [vmem:[%s4436_s19 + $0x20] sm:$0xff] %vm455_vm2, %v1812_v41  ;;  %v1815_v46 = vadd.f32 %v4431_v14, %v1814_v45 }
 0x32e   : > { %2057 = vst.msk [vmem:[%s4436_s19 + $0x38] sm:$0xff] %vm455_vm2, %v1823_v44 }
 0x32f   : > { %2055 = vst.msk [vmem:[%s4436_s19 + $0x28] sm:$0xff] %vm455_vm2, %v1815_v46 }
 0x331   : > { %v3444_v47 = vpop.f32.mrb[40].mxu0 }
 0x332   : > { %v1836_v49 = vadd.f32 %v3444_v47, %v4431_v14  ;;  %v1827_v50 = vpop.f32.mrb[41].mxu0 }
 0x333   : > { %v1828_v51 = vadd.f32 %v4431_v14, %v1827_v50  ;;  %v3445_v54 = vpop.f32.mrb[42].mxu0 }
 0x334   : > { %2060 = vst.msk [vmem:[%s4436_s19 + $0x50] sm:$0xff] %vm455_vm2, %v1836_v49  ;;  %v1839_v55 = vadd.f32 %v3445_v54, %v4431_v14  ;;  %v1830_v56 = vpop.f32.mrb[43].mxu0 }
 0x335   : > { %2058 = vst.msk [vmem:[%s4436_s19 + $0x40] sm:$0xff] %vm455_vm2, %v1828_v51  ;;  %v1831_v58 = vadd.f32 %v4431_v14, %v1830_v56 }
 0x336   : > { %2061 = vst.msk [vmem:[%s4436_s19 + $0x58] sm:$0xff] %vm455_vm2, %v1839_v55 }
 0x337   : > { %2059 = vst.msk [vmem:[%s4436_s19 + $0x48] sm:$0xff] %vm455_vm2, %v1831_v58 }
 0x339   : > { %v3448_v59 = vpop.f32.mrb[44].mxu0 }
 0x33a   : > { %v1852_v60 = vadd.f32 %v3448_v59, %v4431_v14  ;;  %v1843_v61 = vpop.f32.mrb[45].mxu0 }
 0x33b   : > { %v1844_v62 = vadd.f32 %v4431_v14, %v1843_v61  ;;  %v3449_v63 = vpop.f32.mrb[46].mxu0 }
 0x33c   : > { %2064 = vst.msk [vmem:[%s4436_s19 + $0x70] sm:$0xff] %vm455_vm2, %v1852_v60  ;;  %v1855_v0 = vadd.f32 %v3449_v63, %v4431_v14  ;;  %v1846_v1 = vpop.f32.mrb[47].mxu0 }
 0x33d   : > { %2062 = vst.msk [vmem:[%s4436_s19 + $0x60] sm:$0xff] %vm455_vm2, %v1844_v62  ;;  %v1847_v2 = vadd.f32 %v4431_v14, %v1846_v1 }
 0x33e   : > { %2065 = vst.msk [vmem:[%s4436_s19 + $0x78] sm:$0xff] %vm455_vm2, %v1855_v0 }
 0x33f   : > { %2063 = vst.msk [vmem:[%s4436_s19 + $0x68] sm:$0xff] %vm455_vm2, %v1847_v2 }
 0x341   : > { %v3452_v3 = vpop.f32.mrb[48].mxu0 }
 0x342   : > { %v1868_v17 = vadd.f32 %v3452_v3, %v4431_v14  ;;  %v1859_v4 = vpop.f32.mrb[49].mxu0 }
 0x343   : > { %v1860_v5 = vadd.f32 %v4431_v14, %v1859_v4  ;;  %v3453_v6 = vpop.f32.mrb[50].mxu0 }
 0x344   : > { %2068 = vst.msk [vmem:[%s4436_s19 + $0x90] sm:$0xff] %vm455_vm2, %v1868_v17  ;;  %v1871_v7 = vadd.f32 %v3453_v6, %v4431_v14  ;;  %v1862_v8 = vpop.f32.mrb[51].mxu0 }
 0x345   : > { %2066 = vst.msk [vmem:[%s4436_s19 + $0x80] sm:$0xff] %vm455_vm2, %v1860_v5  ;;  %v1863_v9 = vadd.f32 %v4431_v14, %v1862_v8 }
 0x346   : > { %2069 = vst.msk [vmem:[%s4436_s19 + $0x98] sm:$0xff] %vm455_vm2, %v1871_v7 }
 0x347   : > { %2067 = vst.msk [vmem:[%s4436_s19 + $0x88] sm:$0xff] %vm455_vm2, %v1863_v9 }
 0x349   : > { %v3456_v10 = vpop.f32.mrb[52].mxu0 }
 0x34a   : > { %v1884_v11 = vadd.f32 %v3456_v10, %v4431_v14  ;;  %v1875_v12 = vpop.f32.mrb[53].mxu0 }
 0x34b   : > { %v1876_v13 = vadd.f32 %v4431_v14, %v1875_v12  ;;  %v3457_v15 = vpop.f32.mrb[54].mxu0 }
 0x34c   : > { %2072 = vst.msk [vmem:[%s4436_s19 + $0xb0] sm:$0xff] %vm455_vm2, %v1884_v11  ;;  %v1887_v16 = vadd.f32 %v3457_v15, %v4431_v14  ;;  %v1878_v18 = vpop.f32.mrb[55].mxu0 }
 0x34d   : > { %2070 = vst.msk [vmem:[%s4436_s19 + $0xa0] sm:$0xff] %vm455_vm2, %v1876_v13  ;;  %v1879_v20 = vadd.f32 %v4431_v14, %v1878_v18 }
 0x34e   : > { %2073 = vst.msk [vmem:[%s4436_s19 + $0xb8] sm:$0xff] %vm455_vm2, %v1887_v16 }
 0x34f   : > { %2071 = vst.msk [vmem:[%s4436_s19 + $0xa8] sm:$0xff] %vm455_vm2, %v1879_v20 }
 0x351   : > { %v3460_v22 = vpop.f32.mrb[56].mxu0 }
 0x352   : > { %v1900_v23 = vadd.f32 %v3460_v22, %v4431_v14  ;;  %v1891_v25 = vpop.f32.mrb[57].mxu0 }
 0x353   : > { %v1892_v26 = vadd.f32 %v4431_v14, %v1891_v25  ;;  %v3461_v27 = vpop.f32.mrb[58].mxu0 }
 0x354   : > { %2076 = vst.msk [vmem:[%s4436_s19 + $0xd0] sm:$0xff] %vm455_vm2, %v1900_v23  ;;  %v1903_v29 = vadd.f32 %v3461_v27, %v4431_v14  ;;  %v1894_v30 = vpop.f32.mrb[59].mxu0 }
 0x355   : > { %2074 = vst.msk [vmem:[%s4436_s19 + $0xc0] sm:$0xff] %vm455_vm2, %v1892_v26  ;;  %v1895_v28 = vadd.f32 %v4431_v14, %v1894_v30 }
 0x356   : > { %2077 = vst.msk [vmem:[%s4436_s19 + $0xd8] sm:$0xff] %vm455_vm2, %v1903_v29 }
 0x357   : > { %2075 = vst.msk [vmem:[%s4436_s19 + $0xc8] sm:$0xff] %vm455_vm2, %v1895_v28 }
 0x359   : > { %v3464_v42 = vpop.f32.mrb[60].mxu0 }
 0x35a   : > { %v1916_v24 = vadd.f32 %v3464_v42, %v4431_v14  ;;  %v1907_v53 = vpop.f32.mrb[61].mxu0 }
 0x35b   : > { %v1908_v57 = vadd.f32 %v4431_v14, %v1907_v53  ;;  %v3465_v21 = vpop.f32.mrb[62].mxu0 }
 0x35c   : > { %2080 = vst.msk [vmem:[%s4436_s19 + $0xf0] sm:$0xff] %vm455_vm2, %v1916_v24  ;;  %v1919_v48 = vadd.f32 %v3465_v21, %v4431_v14  ;;  %v1910_v52 = vpop.f32.mrb[63].mxu0 }
 0x35d   : > { %2078 = vst.msk [vmem:[%s4436_s19 + $0xe0] sm:$0xff] %vm455_vm2, %v1908_v57  ;;  %v1911_v19 = vadd.f32 %v4431_v14, %v1910_v52 }
 0x35e   : > { %2081 = vst.msk [vmem:[%s4436_s19 + $0xf8] sm:$0xff] %vm455_vm2, %v1919_v48 }
 0x35f   : > { %2079 = vst.msk [vmem:[%s4436_s19 + $0xe8] sm:$0xff] %vm455_vm2, %v1911_v19 }
 0x361   : > { %v3468_v31 = vpop.f32.mrb[64].mxu0 }
 0x362   : > { %v1932_v32 = vadd.f32 %v3468_v31, %v4431_v14  ;;  %v1923_v33 = vpop.f32.mrb[65].mxu0 }
 0x363   : > { %v1924_v34 = vadd.f32 %v4431_v14, %v1923_v33  ;;  %v3469_v35 = vpop.f32.mrb[66].mxu0 }
 0x364   : > { %2084 = vst.msk [vmem:[%s4436_s19 + $0x110] sm:$0xff] %vm455_vm2, %v1932_v32  ;;  %v1935_v36 = vadd.f32 %v3469_v35, %v4431_v14  ;;  %v1926_v37 = vpop.f32.mrb[67].mxu0 }
 0x365   : > { %2082 = vst.msk [vmem:[%s4436_s19 + $0x100] sm:$0xff] %vm455_vm2, %v1924_v34  ;;  %v1927_v38 = vadd.f32 %v4431_v14, %v1926_v37 }
 0x366   : > { %2085 = vst.msk [vmem:[%s4436_s19 + $0x118] sm:$0xff] %vm455_vm2, %v1935_v36 }
 0x367   : > { %2083 = vst.msk [vmem:[%s4436_s19 + $0x108] sm:$0xff] %vm455_vm2, %v1927_v38 }
 0x369   : > { %v3472_v39 = vpop.f32.mrb[68].mxu0 }
 0x36a   : > { %v1948_v40 = vadd.f32 %v3472_v39, %v4431_v14  ;;  %v1939_v41 = vpop.f32.mrb[69].mxu0 }
 0x36b   : > { %v1940_v43 = vadd.f32 %v4431_v14, %v1939_v41  ;;  %v3473_v44 = vpop.f32.mrb[70].mxu0 }
 0x36c   : > { %2088 = vst.msk [vmem:[%s4436_s19 + $0x130] sm:$0xff] %vm455_vm2, %v1948_v40  ;;  %v1951_v45 = vadd.f32 %v3473_v44, %v4431_v14  ;;  %v1942_v46 = vpop.f32.mrb[71].mxu0 }
 0x36d   : > { %2086 = vst.msk [vmem:[%s4436_s19 + $0x120] sm:$0xff] %vm455_vm2, %v1940_v43  ;;  %v1943_v47 = vadd.f32 %v4431_v14, %v1942_v46 }
 0x36e   : > { %2089 = vst.msk [vmem:[%s4436_s19 + $0x138] sm:$0xff] %vm455_vm2, %v1951_v45 }
 0x36f   : > { %2087 = vst.msk [vmem:[%s4436_s19 + $0x128] sm:$0xff] %vm455_vm2, %v1943_v47 }
 0x371   : > { %v3476_v49 = vpop.f32.mrb[72].mxu0 }
 0x372   : > { %v1964_v50 = vadd.f32 %v3476_v49, %v4431_v14  ;;  %v1955_v51 = vpop.f32.mrb[73].mxu0 }
 0x373   : > { %v1956_v54 = vadd.f32 %v4431_v14, %v1955_v51  ;;  %v3477_v55 = vpop.f32.mrb[74].mxu0 }
 0x374   : > { %2092 = vst.msk [vmem:[%s4436_s19 + $0x150] sm:$0xff] %vm455_vm2, %v1964_v50  ;;  %v1967_v56 = vadd.f32 %v3477_v55, %v4431_v14  ;;  %v1958_v58 = vpop.f32.mrb[75].mxu0 }
 0x375   : > { %2090 = vst.msk [vmem:[%s4436_s19 + $0x140] sm:$0xff] %vm455_vm2, %v1956_v54  ;;  %v1959_v59 = vadd.f32 %v4431_v14, %v1958_v58 }
 0x376   : > { %2093 = vst.msk [vmem:[%s4436_s19 + $0x158] sm:$0xff] %vm455_vm2, %v1967_v56 }
 0x377   : > { %2091 = vst.msk [vmem:[%s4436_s19 + $0x148] sm:$0xff] %vm455_vm2, %v1959_v59 }
 0x379   : > { %v3480_v60 = vpop.f32.mrb[76].mxu0 }
 0x37a   : > { %v1980_v61 = vadd.f32 %v3480_v60, %v4431_v14  ;;  %v1971_v62 = vpop.f32.mrb[77].mxu0 }
 0x37b   : > { %v1972_v63 = vadd.f32 %v4431_v14, %v1971_v62  ;;  %v3481_v0 = vpop.f32.mrb[78].mxu0 }
 0x37c   : > { %2096 = vst.msk [vmem:[%s4436_s19 + $0x170] sm:$0xff] %vm455_vm2, %v1980_v61  ;;  %v1983_v1 = vadd.f32 %v3481_v0, %v4431_v14  ;;  %v1974_v2 = vpop.f32.mrb[79].mxu0 }
 0x37d   : > { %2094 = vst.msk [vmem:[%s4436_s19 + $0x160] sm:$0xff] %vm455_vm2, %v1972_v63  ;;  %v1975_v3 = vadd.f32 %v4431_v14, %v1974_v2 }
 0x37e   : > { %2097 = vst.msk [vmem:[%s4436_s19 + $0x178] sm:$0xff] %vm455_vm2, %v1983_v1 }
 0x37f   : > { %2095 = vst.msk [vmem:[%s4436_s19 + $0x168] sm:$0xff] %vm455_vm2, %v1975_v3 }
 0x381   : > { %v3484_v17 = vpop.f32.mrb[80].mxu0 }
 0x382   : > { %v1996_v4 = vadd.f32 %v3484_v17, %v4431_v14  ;;  %v1987_v5 = vpop.f32.mrb[81].mxu0 }
 0x383   : > { %v1988_v6 = vadd.f32 %v4431_v14, %v1987_v5  ;;  %v3485_v7 = vpop.f32.mrb[82].mxu0 }
 0x384   : > { %2100 = vst.msk [vmem:[%s4436_s19 + $0x190] sm:$0xff] %vm455_vm2, %v1996_v4  ;;  %v1999_v8 = vadd.f32 %v3485_v7, %v4431_v14  ;;  %v1990_v9 = vpop.f32.mrb[83].mxu0 }
 0x385   : > { %2098 = vst.msk [vmem:[%s4436_s19 + $0x180] sm:$0xff] %vm455_vm2, %v1988_v6  ;;  %v1991_v10 = vadd.f32 %v4431_v14, %v1990_v9 }
 0x386   : > { %2101 = vst.msk [vmem:[%s4436_s19 + $0x198] sm:$0xff] %vm455_vm2, %v1999_v8 }
 0x387   : > { %2099 = vst.msk [vmem:[%s4436_s19 + $0x188] sm:$0xff] %vm455_vm2, %v1991_v10 }
 0x389   : > { %v3488_v11 = vpop.f32.mrb[84].mxu0 }
 0x38a   : > { %v2012_v12 = vadd.f32 %v3488_v11, %v4431_v14  ;;  %v2003_v13 = vpop.f32.mrb[85].mxu0 }
 0x38b   : > { %v2004_v15 = vadd.f32 %v4431_v14, %v2003_v13  ;;  %v3489_v16 = vpop.f32.mrb[86].mxu0 }
 0x38c   : > { %2104 = vst.msk [vmem:[%s4436_s19 + $0x1b0] sm:$0xff] %vm455_vm2, %v2012_v12  ;;  %v2015_v18 = vadd.f32 %v3489_v16, %v4431_v14  ;;  %v2006_v20 = vpop.f32.mrb[87].mxu0 }
 0x38d   : > { %2102 = vst.msk [vmem:[%s4436_s19 + $0x1a0] sm:$0xff] %vm455_vm2, %v2004_v15  ;;  %v2007_v22 = vadd.f32 %v4431_v14, %v2006_v20 }
 0x38e   : > { %2105 = vst.msk [vmem:[%s4436_s19 + $0x1b8] sm:$0xff] %vm455_vm2, %v2015_v18 }
 0x38f   : > { %2103 = vst.msk [vmem:[%s4436_s19 + $0x1a8] sm:$0xff] %vm455_vm2, %v2007_v22 }
 0x391   : > { %v3492_v23 = vpop.f32.mrb[88].mxu0 }
 0x392   : > { %v2028_v25 = vadd.f32 %v3492_v23, %v4431_v14  ;;  %v2019_v26 = vpop.f32.mrb[89].mxu0 }
 0x393   : > { %v2020_v27 = vadd.f32 %v4431_v14, %v2019_v26  ;;  %v3493_v29 = vpop.f32.mrb[90].mxu0 }
 0x394   : > { %2108 = vst.msk [vmem:[%s4436_s19 + $0x1d0] sm:$0xff] %vm455_vm2, %v2028_v25  ;;  %v2031_v30 = vadd.f32 %v3493_v29, %v4431_v14  ;;  %v2022_v28 = vpop.f32.mrb[91].mxu0 }
 0x395   : > { %2106 = vst.msk [vmem:[%s4436_s19 + $0x1c0] sm:$0xff] %vm455_vm2, %v2020_v27  ;;  %v2023_v42 = vadd.f32 %v4431_v14, %v2022_v28 }
 0x396   : > { %2109 = vst.msk [vmem:[%s4436_s19 + $0x1d8] sm:$0xff] %vm455_vm2, %v2031_v30 }
 0x397   : > { %2107 = vst.msk [vmem:[%s4436_s19 + $0x1c8] sm:$0xff] %vm455_vm2, %v2023_v42 }
 0x399   : > { %v3496_v24 = vpop.f32.mrb[92].mxu0  ;;  %2124 = sbr.rel (!%p3890_p4) target bundleno = 1000 (0x3e8), region = 52 }
 0x39a   : > { %v2044_v53 = vadd.f32 %v3496_v24, %v4431_v14  ;;  %v2035_v57 = vpop.f32.mrb[93].mxu0 }
 0x39b   : > { %v2036_v21 = vadd.f32 %v4431_v14, %v2035_v57  ;;  %v3497_v48 = vpop.f32.mrb[94].mxu0 }
 0x39c   : > { %2112 = vst.msk [vmem:[%s4436_s19 + $0x1f0] sm:$0xff] %vm455_vm2, %v2044_v53  ;;  %v2047_v52 = vadd.f32 %v3497_v48, %v4431_v14  ;;  %v2038_v19 = vpop.f32.mrb[95].mxu0 }
 0x39d   : > { %2110 = vst.msk [vmem:[%s4436_s19 + $0x1e0] sm:$0xff] %vm455_vm2, %v2036_v21  ;;  %v2039_v31 = vadd.f32 %v4431_v14, %v2038_v19 }
 0x39e   : > { %2113 = vst.msk [vmem:[%s4436_s19 + $0x1f8] sm:$0xff] %vm455_vm2, %v2047_v52 }
 0x39f   : > { %2111 = vst.msk [vmem:[%s4436_s19 + $0x1e8] sm:$0xff] %vm455_vm2, %v2039_v31 }
 0x3a0   : > { %s5056_s20 = smov (!%p2127_p8, %s2126_s20), 64 }
 0x3a1   : > { %s3145_s25 = sshll.u32 %s5056_s20, 7 }
 0x3a2   : > { %p3148_p9 = scmp.eq.s32.totalorder %s3145_s25, 0 }
 0x3a3   : > { %s4641_s26 = sshrl.u32 (!%p3148_p9), %s5056_s20, 6 }
 0x3a4   : > { %2135 = sbr.rel (%p3148_p9) target bundleno = 1000 (0x3e8), region = 56  ;;  %p3149_p10 = scmp.le.s32.totalorder (!%p3148_p9), %s4641_s26, 0 }
 0x3ab   : > { %2944 = sbr.rel (%p3149_p10) target bundleno = 979 (0x3d3), region = 204  ;;  %s5042_s29 = smov (!%p3149_p10), %s4635_s24 }
 0x3ac   : > { %s5043_s10 = smov (!%p3149_p10), %s4172_s15  ;;  %s4650_s11 = smov (!%p3149_p10), 0  }
 0x3ad   : > { %s4652_s14 = smov (!%p3149_p10), 0  }
 0x3b2 LB: >> { %v2323_v14 = vld [vmem:[%s3760_s10] sm:$0xff]  ;;  %v2325_v32 = vld [vmem:[%s3760_s10 + $0x8] sm:$0xff]  ;;  %v2327_v33 = vld [vmem:[%s3760_s10 + $0x10] sm:$0xff]  ;;  %s2451_s27 = sadd.s32 1, %s3764_s11  ;;  %s2317_s14 = sadd.s32 1, %s3768_s14   ;;  %s3768_s14 = sphi %s4652_s14, %s2317_s14   ;;  %s3764_s11 = sphi %s4650_s11, %s5046_s11   ;;  %s3760_s10 = sphi %s5043_s10, %s5045_s10   ;;  %s3756_s29 = sphi %s5042_s29, %s5044_s29  }
 0x3b3   : >> { %2324 = vst [vmem:[%s3756_s29] sm:$0xff] %v2323_v14  ;;  %2326 = vst [vmem:[%s3756_s29 + $0x8] sm:$0xff] %v2325_v32  ;;  %v2329_v34 = vld [vmem:[%s3760_s10 + $0x18] sm:$0xff]  ;;  %v2331_v35 = vld [vmem:[%s3760_s10 + $0x20] sm:$0xff]  ;;  %p2452_p11 = scmp.ge.s32.totalorder %s2451_s27, %s4641_s26  ;;  %p2316_p12 = scmp.ge.s32.totalorder %s2317_s14, %s4641_s26 }
 0x3b4   : >> { %2328 = vst [vmem:[%s3756_s29 + $0x10] sm:$0xff] %v2327_v33  ;;  %v2333_v36 = vld [vmem:[%s3760_s10 + $0x28] sm:$0xff]  ;;  %2330 = vst [vmem:[%s3756_s29 + $0x18] sm:$0xff] %v2329_v34  ;;  %v2335_v37 = vld [vmem:[%s3760_s10 + $0x30] sm:$0xff] }
 0x3b5   : >> { %2332 = vst [vmem:[%s3756_s29 + $0x20] sm:$0xff] %v2331_v35  ;;  %2334 = vst [vmem:[%s3756_s29 + $0x28] sm:$0xff] %v2333_v36  ;;  %v2337_v38 = vld [vmem:[%s3760_s10 + $0x38] sm:$0xff]  ;;  %v2339_v39 = vld [vmem:[%s3760_s10 + $0x40] sm:$0xff]  ;;  %s5058_s27 = smov (%p2452_p11, %s2451_s27), 0 }
 0x3b6   : >> { %2336 = vst [vmem:[%s3756_s29 + $0x30] sm:$0xff] %v2335_v37  ;;  %2338 = vst [vmem:[%s3756_s29 + $0x38] sm:$0xff] %v2337_v38  ;;  %v2341_v40 = vld [vmem:[%s3760_s10 + $0x48] sm:$0xff]  ;;  %v2343_v41 = vld [vmem:[%s3760_s10 + $0x50] sm:$0xff]  ;;  %s3150_s16 = sshll.u32 %s5058_s27, 9  ;;  %s5046_s11 = smov %s5058_s27 }
 0x3b7   : >> { %2340 = vst [vmem:[%s3756_s29 + $0x40] sm:$0xff] %v2339_v39  ;;  %v2345_v43 = vld [vmem:[%s3760_s10 + $0x58] sm:$0xff]  ;;  %2342 = vst [vmem:[%s3756_s29 + $0x48] sm:$0xff] %v2341_v40  ;;  %v2347_v44 = vld [vmem:[%s3760_s10 + $0x60] sm:$0xff]  ;;  %s4708_s17 = scalar_lea.vmem %s4172_s15, %s3150_s16 [#allocation2]   ;;  %s4711_s21 = scalar_lea.vmem %s4635_s24, %s3150_s16  }
 0x3b8   : >> { %2344 = vst [vmem:[%s3756_s29 + $0x50] sm:$0xff] %v2343_v41  ;;  %2346 = vst [vmem:[%s3756_s29 + $0x58] sm:$0xff] %v2345_v43  ;;  %v2349_v45 = vld [vmem:[%s3760_s10 + $0x68] sm:$0xff]  ;;  %v2351_v46 = vld [vmem:[%s3760_s10 + $0x70] sm:$0xff] }
 0x3b9   : >> { %2348 = vst [vmem:[%s3756_s29 + $0x60] sm:$0xff] %v2347_v44  ;;  %2350 = vst [vmem:[%s3756_s29 + $0x68] sm:$0xff] %v2349_v45  ;;  %v2353_v47 = vld [vmem:[%s3760_s10 + $0x78] sm:$0xff]  ;;  %v2355_v49 = vld [vmem:[%s3760_s10 + $0x80] sm:$0xff] }
 0x3ba   : >> { %2352 = vst [vmem:[%s3756_s29 + $0x70] sm:$0xff] %v2351_v46  ;;  %v2357_v50 = vld [vmem:[%s3760_s10 + $0x88] sm:$0xff]  ;;  %2354 = vst [vmem:[%s3756_s29 + $0x78] sm:$0xff] %v2353_v47  ;;  %v2359_v51 = vld [vmem:[%s3760_s10 + $0x90] sm:$0xff] }
 0x3bb   : >> { %2356 = vst [vmem:[%s3756_s29 + $0x80] sm:$0xff] %v2355_v49  ;;  %2358 = vst [vmem:[%s3756_s29 + $0x88] sm:$0xff] %v2357_v50  ;;  %v2361_v54 = vld [vmem:[%s3760_s10 + $0x98] sm:$0xff]  ;;  %v2363_v55 = vld [vmem:[%s3760_s10 + $0xa0] sm:$0xff] }
 0x3bc   : >> { %2360 = vst [vmem:[%s3756_s29 + $0x90] sm:$0xff] %v2359_v51  ;;  %2362 = vst [vmem:[%s3756_s29 + $0x98] sm:$0xff] %v2361_v54  ;;  %v2365_v56 = vld [vmem:[%s3760_s10 + $0xa8] sm:$0xff]  ;;  %v2367_v58 = vld [vmem:[%s3760_s10 + $0xb0] sm:$0xff] }
 0x3bd   : >> { %2364 = vst [vmem:[%s3756_s29 + $0xa0] sm:$0xff] %v2363_v55  ;;  %v2369_v59 = vld [vmem:[%s3760_s10 + $0xb8] sm:$0xff]  ;;  %2366 = vst [vmem:[%s3756_s29 + $0xa8] sm:$0xff] %v2365_v56  ;;  %v2371_v60 = vld [vmem:[%s3760_s10 + $0xc0] sm:$0xff] }
 0x3be   : >> { %2368 = vst [vmem:[%s3756_s29 + $0xb0] sm:$0xff] %v2367_v58  ;;  %2370 = vst [vmem:[%s3756_s29 + $0xb8] sm:$0xff] %v2369_v59  ;;  %v2373_v61 = vld [vmem:[%s3760_s10 + $0xc8] sm:$0xff]  ;;  %v2375_v62 = vld [vmem:[%s3760_s10 + $0xd0] sm:$0xff] }
 0x3bf   : >> { %2372 = vst [vmem:[%s3756_s29 + $0xc0] sm:$0xff] %v2371_v60  ;;  %2374 = vst [vmem:[%s3756_s29 + $0xc8] sm:$0xff] %v2373_v61  ;;  %v2377_v63 = vld [vmem:[%s3760_s10 + $0xd8] sm:$0xff]  ;;  %v2379_v0 = vld [vmem:[%s3760_s10 + $0xe0] sm:$0xff] }
 0x3c0   : >> { %2376 = vst [vmem:[%s3756_s29 + $0xd0] sm:$0xff] %v2375_v62  ;;  %v2381_v1 = vld [vmem:[%s3760_s10 + $0xe8] sm:$0xff]  ;;  %2378 = vst [vmem:[%s3756_s29 + $0xd8] sm:$0xff] %v2377_v63  ;;  %v2383_v2 = vld [vmem:[%s3760_s10 + $0xf0] sm:$0xff] }
 0x3c1   : >> { %2380 = vst [vmem:[%s3756_s29 + $0xe0] sm:$0xff] %v2379_v0  ;;  %2382 = vst [vmem:[%s3756_s29 + $0xe8] sm:$0xff] %v2381_v1  ;;  %v2385_v3 = vld [vmem:[%s3760_s10 + $0xf8] sm:$0xff]  ;;  %v2387_v17 = vld [vmem:[%s3760_s10 + $0x100] sm:$0xff] }
 0x3c2   : >> { %2384 = vst [vmem:[%s3756_s29 + $0xf0] sm:$0xff] %v2383_v2  ;;  %2386 = vst [vmem:[%s3756_s29 + $0xf8] sm:$0xff] %v2385_v3  ;;  %v2389_v4 = vld [vmem:[%s3760_s10 + $0x108] sm:$0xff]  ;;  %v2391_v5 = vld [vmem:[%s3760_s10 + $0x110] sm:$0xff] }
 0x3c3   : >> { %2388 = vst [vmem:[%s3756_s29 + $0x100] sm:$0xff] %v2387_v17  ;;  %v2393_v6 = vld [vmem:[%s3760_s10 + $0x118] sm:$0xff]  ;;  %2390 = vst [vmem:[%s3756_s29 + $0x108] sm:$0xff] %v2389_v4  ;;  %v2395_v7 = vld [vmem:[%s3760_s10 + $0x120] sm:$0xff] }
 0x3c4   : >> { %2392 = vst [vmem:[%s3756_s29 + $0x110] sm:$0xff] %v2391_v5  ;;  %2394 = vst [vmem:[%s3756_s29 + $0x118] sm:$0xff] %v2393_v6  ;;  %v2397_v8 = vld [vmem:[%s3760_s10 + $0x128] sm:$0xff]  ;;  %v2399_v9 = vld [vmem:[%s3760_s10 + $0x130] sm:$0xff] }
 0x3c5   : >> { %2396 = vst [vmem:[%s3756_s29 + $0x120] sm:$0xff] %v2395_v7  ;;  %2398 = vst [vmem:[%s3756_s29 + $0x128] sm:$0xff] %v2397_v8  ;;  %v2401_v10 = vld [vmem:[%s3760_s10 + $0x138] sm:$0xff]  ;;  %v2403_v11 = vld [vmem:[%s3760_s10 + $0x140] sm:$0xff] }
 0x3c6   : >> { %2400 = vst [vmem:[%s3756_s29 + $0x130] sm:$0xff] %v2399_v9  ;;  %v2405_v12 = vld [vmem:[%s3760_s10 + $0x148] sm:$0xff]  ;;  %2402 = vst [vmem:[%s3756_s29 + $0x138] sm:$0xff] %v2401_v10  ;;  %v2407_v13 = vld [vmem:[%s3760_s10 + $0x150] sm:$0xff] }
 0x3c7   : >> { %2404 = vst [vmem:[%s3756_s29 + $0x140] sm:$0xff] %v2403_v11  ;;  %2406 = vst [vmem:[%s3756_s29 + $0x148] sm:$0xff] %v2405_v12  ;;  %v2409_v15 = vld [vmem:[%s3760_s10 + $0x158] sm:$0xff]  ;;  %v2411_v16 = vld [vmem:[%s3760_s10 + $0x160] sm:$0xff] }
 0x3c8   : >> { %2408 = vst [vmem:[%s3756_s29 + $0x150] sm:$0xff] %v2407_v13  ;;  %2410 = vst [vmem:[%s3756_s29 + $0x158] sm:$0xff] %v2409_v15  ;;  %v2413_v18 = vld [vmem:[%s3760_s10 + $0x168] sm:$0xff]  ;;  %v2415_v20 = vld [vmem:[%s3760_s10 + $0x170] sm:$0xff] }
 0x3c9   : >> { %2412 = vst [vmem:[%s3756_s29 + $0x160] sm:$0xff] %v2411_v16  ;;  %v2417_v22 = vld [vmem:[%s3760_s10 + $0x178] sm:$0xff]  ;;  %2414 = vst [vmem:[%s3756_s29 + $0x168] sm:$0xff] %v2413_v18  ;;  %v2419_v23 = vld [vmem:[%s3760_s10 + $0x180] sm:$0xff] }
 0x3ca   : >> { %2416 = vst [vmem:[%s3756_s29 + $0x170] sm:$0xff] %v2415_v20  ;;  %2418 = vst [vmem:[%s3756_s29 + $0x178] sm:$0xff] %v2417_v22  ;;  %v2421_v25 = vld [vmem:[%s3760_s10 + $0x188] sm:$0xff]  ;;  %v2423_v26 = vld [vmem:[%s3760_s10 + $0x190] sm:$0xff] }
 0x3cb   : >> { %2420 = vst [vmem:[%s3756_s29 + $0x180] sm:$0xff] %v2419_v23  ;;  %2422 = vst [vmem:[%s3756_s29 + $0x188] sm:$0xff] %v2421_v25  ;;  %v2425_v27 = vld [vmem:[%s3760_s10 + $0x198] sm:$0xff]  ;;  %v2427_v29 = vld [vmem:[%s3760_s10 + $0x1a0] sm:$0xff] }
 0x3cc   : >> { %2424 = vst [vmem:[%s3756_s29 + $0x190] sm:$0xff] %v2423_v26  ;;  %v2429_v30 = vld [vmem:[%s3760_s10 + $0x1a8] sm:$0xff]  ;;  %2426 = vst [vmem:[%s3756_s29 + $0x198] sm:$0xff] %v2425_v27  ;;  %v2431_v28 = vld [vmem:[%s3760_s10 + $0x1b0] sm:$0xff]  ;;  %2319 = sbr.rel (!%p2316_p12) target bundleno = 946 (0x3b2), region = 210 }
 0x3cd   : >> { %2428 = vst [vmem:[%s3756_s29 + $0x1a0] sm:$0xff] %v2427_v29  ;;  %2430 = vst [vmem:[%s3756_s29 + $0x1a8] sm:$0xff] %v2429_v30  ;;  %v2433_v42 = vld [vmem:[%s3760_s10 + $0x1b8] sm:$0xff]  ;;  %v2435_v24 = vld [vmem:[%s3760_s10 + $0x1c0] sm:$0xff] }
 0x3ce   : >> { %2432 = vst [vmem:[%s3756_s29 + $0x1b0] sm:$0xff] %v2431_v28  ;;  %2434 = vst [vmem:[%s3756_s29 + $0x1b8] sm:$0xff] %v2433_v42  ;;  %v2437_v53 = vld [vmem:[%s3760_s10 + $0x1c8] sm:$0xff]  ;;  %v2439_v57 = vld [vmem:[%s3760_s10 + $0x1d0] sm:$0xff] }
 0x3cf   : >> { %2436 = vst [vmem:[%s3756_s29 + $0x1c0] sm:$0xff] %v2435_v24  ;;  %v2441_v21 = vld [vmem:[%s3760_s10 + $0x1d8] sm:$0xff]  ;;  %2438 = vst [vmem:[%s3756_s29 + $0x1c8] sm:$0xff] %v2437_v53  ;;  %v2443_v48 = vld [vmem:[%s3760_s10 + $0x1e0] sm:$0xff] }
 0x3d0   : >> { %2440 = vst [vmem:[%s3756_s29 + $0x1d0] sm:$0xff] %v2439_v57  ;;  %2442 = vst [vmem:[%s3756_s29 + $0x1d8] sm:$0xff] %v2441_v21  ;;  %v2445_v52 = vld [vmem:[%s3760_s10 + $0x1e8] sm:$0xff]  ;;  %v2447_v19 = vld [vmem:[%s3760_s10 + $0x1f0] sm:$0xff] }
 0x3d1   : >> { %2444 = vst [vmem:[%s3756_s29 + $0x1e0] sm:$0xff] %v2443_v48  ;;  %2446 = vst [vmem:[%s3756_s29 + $0x1e8] sm:$0xff] %v2445_v52  ;;  %v2449_v31 = vld [vmem:[%s3760_s10 + $0x1f8] sm:$0xff]  ;;  %s5045_s10 = smov %s4708_s17 }
 0x3d2   : >> { %2448 = vst [vmem:[%s3756_s29 + $0x1f0] sm:$0xff] %v2447_v19  ;;  %2450 = vst [vmem:[%s3756_s29 + $0x1f8] sm:$0xff] %v2449_v31  ;;  %s5044_s29 = smov %s4711_s21 }
 0x3d3 PF: > { %s4816_s22 = sand.u32 63, %s5056_s20   ;;  %s3175_s23 = sshll.u32 %s4641_s26, 9 }
 0x3d4   : > { %s2462_s25 = scalar_lea.vmem %s4172_s15, %s3175_s23 [#allocation2]   ;;  %s2464_s16 = scalar_lea.vmem %s4635_s24, %s3175_s23  }
 0x3d5   : > { %p3155_p13 = scmp.le.s32.totalorder %s4816_s22, 0 }
 0x3d6   : > { %s3770_s21 = smov (!%p3155_p13), %s2464_s16   ;;  %s3774_s17 = smov (!%p3155_p13), %s2462_s25  }
 0x3d7   : > { %2958 = sbr.rel (%p3155_p13) target bundleno = 1000 (0x3e8), region = 215  ;;  %s3778_s0 = smov (!%p3155_p13), 0  }
 0x3d8   : > { %s3782_s27 = smov (!%p3155_p13), 0  }
 0x3de LB: >> { %v2474_v14 = vld [vmem:[%s3776_s17] sm:$0xff]  ;;  %s2476_s20 = sadd.s32 1, %s3780_s0  ;;  %s2468_s27 = sadd.s32 1, %s3784_s27   ;;  %s3784_s27 = sphi %s3782_s27, %s2468_s27   ;;  %s3780_s0 = sphi %s3778_s0, %s3779_s0   ;;  %s3776_s17 = sphi %s3774_s17, %s2481_s17   ;;  %s3772_s21 = sphi %s3770_s21, %s2482_s21  }
 0x3df   : >> { %2475 = vst [vmem:[%s3772_s21] sm:$0xff] %v2474_v14  ;;  %p2477_p0 = scmp.ge.s32.totalorder %s2476_s20, %s4816_s22  ;;  %p2467_p1 = scmp.ge.s32.totalorder %s2468_s27, %s4816_s22 }
 0x3e1   : >> { %s5060_s20 = smov (%p2477_p0, %s2476_s20), 0  ;;  %2470 = sbr.rel (!%p2467_p1) target bundleno = 990 (0x3de), region = 221 }
 0x3e2   : >> { %s3156_s15 = sshll.u32 %s5060_s20, 3  ;;  %s3779_s0 = smov %s5060_s20  }
 0x3e3   : >> { %s2481_s17 = scalar_lea.vmem %s2462_s25, %s3156_s15 [#allocation2]   ;;  %s2482_s21 = scalar_lea.vmem %s2464_s16, %s3156_s15  }
 0x3e8 PF: > { %2488 = sbr.rel (!%p3890_p4) target bundleno = 1079 (0x437), region = 104  ;;  %s2490_s0 = ssub.s32 (%p3890_p4), 125, %s3901_s18 }
 0x3e9   : > { %s3177_s24 = sshll.u32 (%p3890_p4), %s3878_s30, 9  ;;  %p2491_p2 = scmp.lt.s32.totalorder (%p3890_p4), %s2490_s0, 64 }
 0x3ea   : > { %s4831_s10 = scalar_lea.vmem (%p3890_p4), %s5038_s8, %s3177_s24  }
 0x3ef   : > { %s5062_s0 = smov (!%p2491_p2, %s2490_s0), 64 }
 0x3f0   : > { %s3159_s11 = sshll.u32 %s5062_s0, 7 }
 0x3f1   : > { %p3162_p3 = scmp.eq.s32.totalorder %s3159_s11, 0 }
 0x3f2   : > { %s4837_s14 = sshrl.u32 (!%p3162_p3), %s5062_s0, 6 }
 0x3f3   : > { %2499 = sbr.rel (%p3162_p3) target bundleno = 1079 (0x437), region = 108  ;;  %p3163_p4 = scmp.le.s32.totalorder (!%p3162_p3), %s4837_s14, 0 }
 0x3fa   : > { %2972 = sbr.rel (%p3163_p4) target bundleno = 1058 (0x422), region = 226  ;;  %s5047_s30 = smov (!%p3163_p4), %s4831_s10 }
 0x3fb   : > { %s5048_s13 = smov (!%p3163_p4), %s4436_s19  ;;  %s4846_s18 = smov (!%p3163_p4), 0  }
 0x3fc   : > { %s4848_s22 = smov (!%p3163_p4), 0  }
 0x401 LB: >> { %v2687_v32 = vld [vmem:[%s3792_s13] sm:$0xff]  ;;  %v2689_v33 = vld [vmem:[%s3792_s13 + $0x8] sm:$0xff]  ;;  %v2691_v34 = vld [vmem:[%s3792_s13 + $0x10] sm:$0xff]  ;;  %s2815_s23 = sadd.s32 1, %s3796_s18  ;;  %s2681_s22 = sadd.s32 1, %s3800_s22   ;;  %s3800_s22 = sphi %s4848_s22, %s2681_s22   ;;  %s3796_s18 = sphi %s4846_s18, %s5051_s18   ;;  %s3792_s13 = sphi %s5048_s13, %s5050_s13   ;;  %s3788_s30 = sphi %s5047_s30, %s5049_s30  }
 0x402   : >> { %2688 = vst [vmem:[%s3788_s30] sm:$0xff] %v2687_v32  ;;  %2690 = vst [vmem:[%s3788_s30 + $0x8] sm:$0xff] %v2689_v33  ;;  %v2693_v35 = vld [vmem:[%s3792_s13 + $0x18] sm:$0xff]  ;;  %v2695_v36 = vld [vmem:[%s3792_s13 + $0x20] sm:$0xff]  ;;  %p2816_p5 = scmp.ge.s32.totalorder %s2815_s23, %s4837_s14  ;;  %p2680_p6 = scmp.ge.s32.totalorder %s2681_s22, %s4837_s14 }
 0x403   : >> { %2692 = vst [vmem:[%s3788_s30 + $0x10] sm:$0xff] %v2691_v34  ;;  %v2697_v37 = vld [vmem:[%s3792_s13 + $0x28] sm:$0xff]  ;;  %2694 = vst [vmem:[%s3788_s30 + $0x18] sm:$0xff] %v2693_v35  ;;  %v2699_v38 = vld [vmem:[%s3792_s13 + $0x30] sm:$0xff] }
 0x404   : >> { %2696 = vst [vmem:[%s3788_s30 + $0x20] sm:$0xff] %v2695_v36  ;;  %2698 = vst [vmem:[%s3788_s30 + $0x28] sm:$0xff] %v2697_v37  ;;  %v2701_v39 = vld [vmem:[%s3792_s13 + $0x38] sm:$0xff]  ;;  %v2703_v40 = vld [vmem:[%s3792_s13 + $0x40] sm:$0xff]  ;;  %s5064_s23 = smov (%p2816_p5, %s2815_s23), 0 }
 0x405   : >> { %2700 = vst [vmem:[%s3788_s30 + $0x30] sm:$0xff] %v2699_v38  ;;  %2702 = vst [vmem:[%s3788_s30 + $0x38] sm:$0xff] %v2701_v39  ;;  %v2705_v41 = vld [vmem:[%s3792_s13 + $0x48] sm:$0xff]  ;;  %v2707_v43 = vld [vmem:[%s3792_s13 + $0x50] sm:$0xff]  ;;  %s3164_s25 = sshll.u32 %s5064_s23, 9  ;;  %s5051_s18 = smov %s5064_s23 }
 0x406   : >> { %2704 = vst [vmem:[%s3788_s30 + $0x40] sm:$0xff] %v2703_v40  ;;  %v2709_v44 = vld [vmem:[%s3792_s13 + $0x58] sm:$0xff]  ;;  %2706 = vst [vmem:[%s3788_s30 + $0x48] sm:$0xff] %v2705_v41  ;;  %v2711_v45 = vld [vmem:[%s3792_s13 + $0x60] sm:$0xff]  ;;  %s4904_s16 = scalar_lea.vmem %s4436_s19, %s3164_s25 [#allocation3]   ;;  %s4907_s21 = scalar_lea.vmem %s4831_s10, %s3164_s25  }
 0x407   : >> { %2708 = vst [vmem:[%s3788_s30 + $0x50] sm:$0xff] %v2707_v43  ;;  %2710 = vst [vmem:[%s3788_s30 + $0x58] sm:$0xff] %v2709_v44  ;;  %v2713_v46 = vld [vmem:[%s3792_s13 + $0x68] sm:$0xff]  ;;  %v2715_v47 = vld [vmem:[%s3792_s13 + $0x70] sm:$0xff] }
 0x408   : >> { %2712 = vst [vmem:[%s3788_s30 + $0x60] sm:$0xff] %v2711_v45  ;;  %2714 = vst [vmem:[%s3788_s30 + $0x68] sm:$0xff] %v2713_v46  ;;  %v2717_v49 = vld [vmem:[%s3792_s13 + $0x78] sm:$0xff]  ;;  %v2719_v50 = vld [vmem:[%s3792_s13 + $0x80] sm:$0xff] }
 0x409   : >> { %2716 = vst [vmem:[%s3788_s30 + $0x70] sm:$0xff] %v2715_v47  ;;  %v2721_v51 = vld [vmem:[%s3792_s13 + $0x88] sm:$0xff]  ;;  %2718 = vst [vmem:[%s3788_s30 + $0x78] sm:$0xff] %v2717_v49  ;;  %v2723_v54 = vld [vmem:[%s3792_s13 + $0x90] sm:$0xff] }
 0x40a   : >> { %2720 = vst [vmem:[%s3788_s30 + $0x80] sm:$0xff] %v2719_v50  ;;  %2722 = vst [vmem:[%s3788_s30 + $0x88] sm:$0xff] %v2721_v51  ;;  %v2725_v55 = vld [vmem:[%s3792_s13 + $0x98] sm:$0xff]  ;;  %v2727_v56 = vld [vmem:[%s3792_s13 + $0xa0] sm:$0xff] }
 0x40b   : >> { %2724 = vst [vmem:[%s3788_s30 + $0x90] sm:$0xff] %v2723_v54  ;;  %2726 = vst [vmem:[%s3788_s30 + $0x98] sm:$0xff] %v2725_v55  ;;  %v2729_v58 = vld [vmem:[%s3792_s13 + $0xa8] sm:$0xff]  ;;  %v2731_v59 = vld [vmem:[%s3792_s13 + $0xb0] sm:$0xff] }
 0x40c   : >> { %2728 = vst [vmem:[%s3788_s30 + $0xa0] sm:$0xff] %v2727_v56  ;;  %v2733_v60 = vld [vmem:[%s3792_s13 + $0xb8] sm:$0xff]  ;;  %2730 = vst [vmem:[%s3788_s30 + $0xa8] sm:$0xff] %v2729_v58  ;;  %v2735_v61 = vld [vmem:[%s3792_s13 + $0xc0] sm:$0xff] }
 0x40d   : >> { %2732 = vst [vmem:[%s3788_s30 + $0xb0] sm:$0xff] %v2731_v59  ;;  %2734 = vst [vmem:[%s3788_s30 + $0xb8] sm:$0xff] %v2733_v60  ;;  %v2737_v62 = vld [vmem:[%s3792_s13 + $0xc8] sm:$0xff]  ;;  %v2739_v63 = vld [vmem:[%s3792_s13 + $0xd0] sm:$0xff] }
 0x40e   : >> { %2736 = vst [vmem:[%s3788_s30 + $0xc0] sm:$0xff] %v2735_v61  ;;  %2738 = vst [vmem:[%s3788_s30 + $0xc8] sm:$0xff] %v2737_v62  ;;  %v2741_v0 = vld [vmem:[%s3792_s13 + $0xd8] sm:$0xff]  ;;  %v2743_v1 = vld [vmem:[%s3792_s13 + $0xe0] sm:$0xff] }
 0x40f   : >> { %2740 = vst [vmem:[%s3788_s30 + $0xd0] sm:$0xff] %v2739_v63  ;;  %v2745_v2 = vld [vmem:[%s3792_s13 + $0xe8] sm:$0xff]  ;;  %2742 = vst [vmem:[%s3788_s30 + $0xd8] sm:$0xff] %v2741_v0  ;;  %v2747_v3 = vld [vmem:[%s3792_s13 + $0xf0] sm:$0xff] }
 0x410   : >> { %2744 = vst [vmem:[%s3788_s30 + $0xe0] sm:$0xff] %v2743_v1  ;;  %2746 = vst [vmem:[%s3788_s30 + $0xe8] sm:$0xff] %v2745_v2  ;;  %v2749_v17 = vld [vmem:[%s3792_s13 + $0xf8] sm:$0xff]  ;;  %v2751_v4 = vld [vmem:[%s3792_s13 + $0x100] sm:$0xff] }
 0x411   : >> { %2748 = vst [vmem:[%s3788_s30 + $0xf0] sm:$0xff] %v2747_v3  ;;  %2750 = vst [vmem:[%s3788_s30 + $0xf8] sm:$0xff] %v2749_v17  ;;  %v2753_v5 = vld [vmem:[%s3792_s13 + $0x108] sm:$0xff]  ;;  %v2755_v6 = vld [vmem:[%s3792_s13 + $0x110] sm:$0xff] }
 0x412   : >> { %2752 = vst [vmem:[%s3788_s30 + $0x100] sm:$0xff] %v2751_v4  ;;  %v2757_v7 = vld [vmem:[%s3792_s13 + $0x118] sm:$0xff]  ;;  %2754 = vst [vmem:[%s3788_s30 + $0x108] sm:$0xff] %v2753_v5  ;;  %v2759_v8 = vld [vmem:[%s3792_s13 + $0x120] sm:$0xff] }
 0x413   : >> { %2756 = vst [vmem:[%s3788_s30 + $0x110] sm:$0xff] %v2755_v6  ;;  %2758 = vst [vmem:[%s3788_s30 + $0x118] sm:$0xff] %v2757_v7  ;;  %v2761_v9 = vld [vmem:[%s3792_s13 + $0x128] sm:$0xff]  ;;  %v2763_v10 = vld [vmem:[%s3792_s13 + $0x130] sm:$0xff] }
 0x414   : >> { %2760 = vst [vmem:[%s3788_s30 + $0x120] sm:$0xff] %v2759_v8  ;;  %2762 = vst [vmem:[%s3788_s30 + $0x128] sm:$0xff] %v2761_v9  ;;  %v2765_v11 = vld [vmem:[%s3792_s13 + $0x138] sm:$0xff]  ;;  %v2767_v12 = vld [vmem:[%s3792_s13 + $0x140] sm:$0xff] }
 0x415   : >> { %2764 = vst [vmem:[%s3788_s30 + $0x130] sm:$0xff] %v2763_v10  ;;  %v2769_v13 = vld [vmem:[%s3792_s13 + $0x148] sm:$0xff]  ;;  %2766 = vst [vmem:[%s3788_s30 + $0x138] sm:$0xff] %v2765_v11  ;;  %v2771_v15 = vld [vmem:[%s3792_s13 + $0x150] sm:$0xff] }
 0x416   : >> { %2768 = vst [vmem:[%s3788_s30 + $0x140] sm:$0xff] %v2767_v12  ;;  %2770 = vst [vmem:[%s3788_s30 + $0x148] sm:$0xff] %v2769_v13  ;;  %v2773_v16 = vld [vmem:[%s3792_s13 + $0x158] sm:$0xff]  ;;  %v2775_v18 = vld [vmem:[%s3792_s13 + $0x160] sm:$0xff] }
 0x417   : >> { %2772 = vst [vmem:[%s3788_s30 + $0x150] sm:$0xff] %v2771_v15  ;;  %2774 = vst [vmem:[%s3788_s30 + $0x158] sm:$0xff] %v2773_v16  ;;  %v2777_v20 = vld [vmem:[%s3792_s13 + $0x168] sm:$0xff]  ;;  %v2779_v22 = vld [vmem:[%s3792_s13 + $0x170] sm:$0xff] }
 0x418   : >> { %2776 = vst [vmem:[%s3788_s30 + $0x160] sm:$0xff] %v2775_v18  ;;  %v2781_v23 = vld [vmem:[%s3792_s13 + $0x178] sm:$0xff]  ;;  %2778 = vst [vmem:[%s3788_s30 + $0x168] sm:$0xff] %v2777_v20  ;;  %v2783_v25 = vld [vmem:[%s3792_s13 + $0x180] sm:$0xff] }
 0x419   : >> { %2780 = vst [vmem:[%s3788_s30 + $0x170] sm:$0xff] %v2779_v22  ;;  %2782 = vst [vmem:[%s3788_s30 + $0x178] sm:$0xff] %v2781_v23  ;;  %v2785_v26 = vld [vmem:[%s3792_s13 + $0x188] sm:$0xff]  ;;  %v2787_v27 = vld [vmem:[%s3792_s13 + $0x190] sm:$0xff] }
 0x41a   : >> { %2784 = vst [vmem:[%s3788_s30 + $0x180] sm:$0xff] %v2783_v25  ;;  %2786 = vst [vmem:[%s3788_s30 + $0x188] sm:$0xff] %v2785_v26  ;;  %v2789_v29 = vld [vmem:[%s3792_s13 + $0x198] sm:$0xff]  ;;  %v2791_v30 = vld [vmem:[%s3792_s13 + $0x1a0] sm:$0xff] }
 0x41b   : >> { %2788 = vst [vmem:[%s3788_s30 + $0x190] sm:$0xff] %v2787_v27  ;;  %v2793_v28 = vld [vmem:[%s3792_s13 + $0x1a8] sm:$0xff]  ;;  %2790 = vst [vmem:[%s3788_s30 + $0x198] sm:$0xff] %v2789_v29  ;;  %v2795_v42 = vld [vmem:[%s3792_s13 + $0x1b0] sm:$0xff]  ;;  %2683 = sbr.rel (!%p2680_p6) target bundleno = 1025 (0x401), region = 232 }
 0x41c   : >> { %2792 = vst [vmem:[%s3788_s30 + $0x1a0] sm:$0xff] %v2791_v30  ;;  %2794 = vst [vmem:[%s3788_s30 + $0x1a8] sm:$0xff] %v2793_v28  ;;  %v2797_v24 = vld [vmem:[%s3792_s13 + $0x1b8] sm:$0xff]  ;;  %v2799_v53 = vld [vmem:[%s3792_s13 + $0x1c0] sm:$0xff] }
 0x41d   : >> { %2796 = vst [vmem:[%s3788_s30 + $0x1b0] sm:$0xff] %v2795_v42  ;;  %2798 = vst [vmem:[%s3788_s30 + $0x1b8] sm:$0xff] %v2797_v24  ;;  %v2801_v57 = vld [vmem:[%s3792_s13 + $0x1c8] sm:$0xff]  ;;  %v2803_v21 = vld [vmem:[%s3792_s13 + $0x1d0] sm:$0xff] }
 0x41e   : >> { %2800 = vst [vmem:[%s3788_s30 + $0x1c0] sm:$0xff] %v2799_v53  ;;  %v2805_v48 = vld [vmem:[%s3792_s13 + $0x1d8] sm:$0xff]  ;;  %2802 = vst [vmem:[%s3788_s30 + $0x1c8] sm:$0xff] %v2801_v57  ;;  %v2807_v52 = vld [vmem:[%s3792_s13 + $0x1e0] sm:$0xff] }
 0x41f   : >> { %2804 = vst [vmem:[%s3788_s30 + $0x1d0] sm:$0xff] %v2803_v21  ;;  %2806 = vst [vmem:[%s3788_s30 + $0x1d8] sm:$0xff] %v2805_v48  ;;  %v2809_v19 = vld [vmem:[%s3792_s13 + $0x1e8] sm:$0xff]  ;;  %v2811_v31 = vld [vmem:[%s3792_s13 + $0x1f0] sm:$0xff] }
 0x420   : >> { %2808 = vst [vmem:[%s3788_s30 + $0x1e0] sm:$0xff] %v2807_v52  ;;  %2810 = vst [vmem:[%s3788_s30 + $0x1e8] sm:$0xff] %v2809_v19  ;;  %v2813_v14 = vld [vmem:[%s3792_s13 + $0x1f8] sm:$0xff]  ;;  %s5050_s13 = smov %s4904_s16 }
 0x421   : >> { %2812 = vst [vmem:[%s3788_s30 + $0x1f0] sm:$0xff] %v2811_v31  ;;  %2814 = vst [vmem:[%s3788_s30 + $0x1f8] sm:$0xff] %v2813_v14  ;;  %s5049_s30 = smov %s4907_s21 }
 0x422 PF: > { %s5012_s17 = sand.u32 63, %s5062_s0   ;;  %s3178_s27 = sshll.u32 %s4837_s14, 9 }
 0x423   : > { %s2826_s20 = scalar_lea.vmem %s4436_s19, %s3178_s27 [#allocation3]   ;;  %s2828_s15 = scalar_lea.vmem %s4831_s10, %s3178_s27  }
 0x424   : > { %p3169_p7 = scmp.le.s32.totalorder %s5012_s17, 0 }
 0x425   : > { %s3802_s24 = smov (!%p3169_p7), %s2828_s15   ;;  %s3806_s26 = smov (!%p3169_p7), %s2826_s20  }
 0x426   : > { %2986 = sbr.rel (%p3169_p7) target bundleno = 1079 (0x437), region = 237  ;;  %s3810_s29 = smov (!%p3169_p7), 0  }
 0x427   : > { %s3814_s11 = smov (!%p3169_p7), 0  }
 0x42d LB: >> { %v2838_v32 = vld [vmem:[%s3808_s26] sm:$0xff]  ;;  %s2840_s0 = sadd.s32 1, %s3812_s29  ;;  %s2832_s11 = sadd.s32 1, %s3816_s11   ;;  %s3816_s11 = sphi %s3814_s11, %s2832_s11   ;;  %s3812_s29 = sphi %s3810_s29, %s3811_s29   ;;  %s3808_s26 = sphi %s3806_s26, %s2845_s26   ;;  %s3804_s24 = sphi %s3802_s24, %s2846_s24  }
 0x42e   : >> { %2839 = vst [vmem:[%s3804_s24] sm:$0xff] %v2838_v32  ;;  %p2841_p8 = scmp.ge.s32.totalorder %s2840_s0, %s5012_s17  ;;  %p2831_p9 = scmp.ge.s32.totalorder %s2832_s11, %s5012_s17 }
 0x430   : >> { %s5066_s0 = smov (%p2841_p8, %s2840_s0), 0  ;;  %2834 = sbr.rel (!%p2831_p9) target bundleno = 1069 (0x42d), region = 243 }
 0x431   : >> { %s3170_s19 = sshll.u32 %s5066_s0, 3  ;;  %s3811_s29 = smov %s5066_s0  }
 0x432   : >> { %s2845_s26 = scalar_lea.vmem %s2826_s20, %s3170_s19 [#allocation3]   ;;  %s2846_s24 = scalar_lea.vmem %s2828_s15, %s3170_s19  }
 0x437 PF: > { %p16_p10 = scmp.ge.s32.totalorder %s3880_s9, 4   ;;  %s5052_s27 = smov %s3748_s28 }
 0x438   : > { %s5053_s28 = smov %s3888_s12  ;;  %s5054_s29 = smov %s3880_s9 }
 0x439   :  { %18 = sbr.rel (!%p16_p10) target bundleno = 4 (0x4), region = 254 }

</bundles_post_ra>
